<compile_context>
chip_gen: v6e
topology: v6e:2x2x1
jax: 0.10.0
libtpu: 0.0.40
codegen_flags: <defaults>
</compile_context>

<pallas_src>
import numpy as np
import jax
import jax.numpy as jnp
from jax import lax
from jax.experimental import pallas as pl
from jax.experimental.pallas import tpu as pltpu

# ----- problem sizes (small but consistent with the module) -----------------
N = 2
C_IN = 4
H = W = 14                          # required: 128 * 4 * 4 == 2048 == fc1 input
POOL_K, POOL_S = 5, 3
OH = (H - POOL_K) // POOL_S + 1     # 4
OW = (W - POOL_K) // POOL_S + 1     # 4
C_CONV = 128
FC1_IN = C_CONV * OH * OW           # 2048
FC1_OUT = 1024
NUM_CLASSES = 10
N_SPLIT = 2                         # FC1_OUT split -> partial logits (v7x: one half per TC)
FC1_HALF = FC1_OUT // N_SPLIT       # 512


# ----- pooling matrix for AvgPool2d(kernel=5, stride=3), built once ----------
def _make_pool_matrix(h, w, k, s, oh, ow):
    p = np.zeros((h * w, oh * ow), dtype=np.float32)
    inv = 1.0 / float(k * k)
    for oi in range(oh):
        for oj in range(ow):
            for di in range(k):
                for dj in range(k):
                    hh = oi * s + di
                    ww = oj * s + dj
                    p[hh * w + ww, oi * ow + oj] += inv
    return p


_POOL_MAT_NP = _make_pool_matrix(H, W, POOL_K, POOL_S, OH, OW)   # np.float32 constant


# ----- Pallas kernel: fc1 + ReLU + fc2 (one FC1_OUT half per grid step) ------
def _mlp_kernel(f_ref, w1_ref, b1_ref, w2_ref, o_ref):
    # f_ref:  (n, 2048)        bf16  (flattened conv features, same block both steps)
    # w1_ref: (2048, 512)      bf16  (pre-transposed fc1 weight, half of FC1_OUT)
    # b1_ref: (1, 512)         f32
    # w2_ref: (512, 10)        bf16  (pre-transposed fc2 weight, matching rows)
    # o_ref:  (1, n, 10)       f32   partial logits (summed + b2 in the wrapper)
    h = jnp.dot(f_ref[...], w1_ref[...], preferred_element_type=jnp.float32)
    h = jnp.maximum(h + b1_ref[...], 0.0)                       # ReLU(fc1 half)
    res = jnp.dot(h.astype(jnp.bfloat16), w2_ref[...],
                  preferred_element_type=jnp.float32)           # partial fc2
    o_ref[...] = res[None]


# ----- one-time parameter prep (outside jit: no per-call HBM round trip) -----
def prepare_params(wc, bc, w1, b1, w2, b2):
    """Transpose FC weights to MXU-native (in, out) layout and cast to bf16."""
    w1t = jnp.asarray(w1).T.astype(jnp.bfloat16)    # (2048, 1024)
    w2t = jnp.asarray(w2).T.astype(jnp.bfloat16)    # (1024, 10)
    return (jnp.asarray(wc), jnp.asarray(bc), w1t,
            jnp.asarray(b1), w2t, jnp.asarray(b2))


# ----- jitted forward ---------------------------------------------------------
@jax.jit
def inception_aux_forward(x, prepared_params):
    wc, bc, w1t, b1, w2t, b2 = prepared_params
    n, c, h, w = x.shape
    assert h == H and w == W, "pool matrix built for 14x14 input"

    # AvgPool2d(5,3) as a matmul with the precomputed pool matrix, then the
    # 1x1 conv + bias + ReLU — plain jnp (tiny, fused by XLA; a pallas_call
    # here costs more in launch overhead than the work itself).
    pmat = jnp.asarray(_POOL_MAT_NP)                               # jit constant
    x2 = x.reshape(n * c, h * w).astype(jnp.float32)
    pooled = (x2 @ pmat).reshape(n, c, OH * OW)                    # (n, c, 16)
    conv = jnp.einsum("kc,nco->nko", wc, pooled) + bc[None, :, None]
    conv = jnp.maximum(conv, 0.0)                                  # (n, 128, 16)
    # channel-major flatten == torch.flatten(x, 1) on NCHW
    feat = conv.reshape(n, FC1_IN).astype(jnp.bfloat16)

    # dropout(0.5) in inference mode -> identity

    partials = pl.pallas_call(
        _mlp_kernel,
        out_shape=jax.ShapeDtypeStruct((N_SPLIT, n, NUM_CLASSES), jnp.float32),
        grid_spec=pltpu.PrefetchScalarGridSpec(
            num_scalar_prefetch=0,
            grid=(N_SPLIT,),
            in_specs=[
                pl.BlockSpec((n, FC1_IN), lambda j: (0, 0)),            # feat (resident)
                pl.BlockSpec((FC1_IN, FC1_HALF), lambda j: (0, j)),     # w1^T half (bf16)
                pl.BlockSpec((1, FC1_HALF), lambda j: (0, j)),          # b1 half
                pl.BlockSpec((FC1_HALF, NUM_CLASSES), lambda j: (j, 0)),  # w2^T rows (bf16)
            ],
            out_specs=pl.BlockSpec((1, n, NUM_CLASSES), lambda j: (j, 0, 0)),
        ),
        compiler_params=pltpu.CompilerParams(
            dimension_semantics=("parallel",)),
    )(feat, w1t, b1.reshape(1, FC1_OUT), w2t)

    return partials.sum(axis=0) + b2[None, :]


# ----- pure-JAX reference for correctness (f32, native PyTorch layouts) ------
def _reference(x, params):
    wc, bc, w1, b1, w2, b2 = params
    pooled = lax.reduce_window(x, 0.0, lax.add,
                               (1, 1, POOL_K, POOL_K),
                               (1, 1, POOL_S, POOL_S), "VALID") / float(POOL_K * POOL_K)
    conv = jnp.einsum("kc,nchw->nkhw", wc, pooled) + bc[None, :, None, None]
    conv = jnp.maximum(conv, 0.0)
    flat = conv.reshape(x.shape[0], -1)
    h1 = jnp.maximum(flat @ w1.T + b1, 0.0)
    return h1 @ w2.T + b2


if __name__ == "__main__":
    key = jax.random.PRNGKey(0)
    kx, k1, k2, k3, k4, k5, k6 = jax.random.split(key, 7)

    x = jax.random.normal(kx, (N, C_IN, H, W), dtype=jnp.float32)

    # deterministic parameter init (same shapes as the PyTorch module)
    wc = jax.random.normal(k1, (C_CONV, C_IN), dtype=jnp.float32) * (1.0 / np.sqrt(C_IN))
    bc = jax.random.normal(k2, (C_CONV,), dtype=jnp.float32) * 0.01
    w1 = jax.random.normal(k3, (FC1_OUT, FC1_IN), dtype=jnp.float32) * (1.0 / np.sqrt(FC1_IN))
    b1 = jax.random.normal(k4, (FC1_OUT,), dtype=jnp.float32) * 0.01
    w2 = jax.random.normal(k5, (NUM_CLASSES, FC1_OUT), dtype=jnp.float32) * (1.0 / np.sqrt(FC1_OUT))
    b2 = jax.random.normal(k6, (NUM_CLASSES,), dtype=jnp.float32) * 0.01

    params = (wc, bc, w1, b1, w2, b2)
    prepared = prepare_params(*params)          # one-time bf16 + transpose

    out = jax.block_until_ready(inception_aux_forward(x, prepared))
    ref = jax.block_until_ready(_reference(x, params))

    assert out.shape == (N, NUM_CLASSES), out.shape
    np.testing.assert_allclose(np.asarray(out), np.asarray(ref), rtol=5e-2, atol=5e-2)
    print("KERNEL_OK")
</pallas_src>

<mosaic_0001>
module attributes {stable_mosaic.version = 11 : i64} {
  func.func @_mlp_kernel(%arg0: i32, %arg1: memref<2x2048xbf16, #tpu.memory_space<vmem>>, %arg2: memref<2048x512xbf16, #tpu.memory_space<vmem>>, %arg3: memref<1x512xf32, #tpu.memory_space<vmem>>, %arg4: memref<512x10xbf16, #tpu.memory_space<vmem>>, %arg5: memref<1x2x10xf32, #tpu.memory_space<vmem>>) attributes {dimension_semantics = [#tpu.dimension_semantics<parallel>], iteration_bounds = array<i64: 2>, scalar_prefetch = 0 : i64, scratch_operands = 0 : i64, tpu.core_type = #tpu.core_type<tc>, window_params = [{pipeline_mode = #tpu.pipeline_mode<synchronous>, transform_indices = @transform_0, window_bounds = array<i64: 2, 2048>}, {transform_indices = @transform_1, window_bounds = array<i64: 2048, 512>}, {transform_indices = @transform_2, window_bounds = array<i64: 1, 512>}, {transform_indices = @transform_3, window_bounds = array<i64: 512, 10>}, {transform_indices = @transform_4, window_bounds = array<i64: 1, 2, 10>}]} {
    %c0 = arith.constant 0 : index
    %c0_0 = arith.constant 0 : index
    %0 = vector.load %arg1[%c0, %c0_0] : memref<2x2048xbf16, #tpu.memory_space<vmem>>, vector<2x2048xbf16>
    %c0_1 = arith.constant 0 : index
    %c0_2 = arith.constant 0 : index
    %1 = vector.load %arg2[%c0_1, %c0_2] : memref<2048x512xbf16, #tpu.memory_space<vmem>>, vector<2048x512xbf16>
    %cst = arith.constant dense<0.000000e+00> : vector<2x512xf32>
    %2 = tpu.matmul %0, %1, %cst {dimension_numbers = #tpu.dot_dimension_numbers<[1], [0], [0], [1], [0, 0, 1, 1], [], []>} : vector<2x2048xbf16>, vector<2048x512xbf16>, vector<2x512xf32> -> vector<2x512xf32>
    %c0_3 = arith.constant 0 : index
    %c0_4 = arith.constant 0 : index
    %3 = vector.load %arg3[%c0_3, %c0_4] : memref<1x512xf32, #tpu.memory_space<vmem>>, vector<1x512xf32>
    %4 = vector.broadcast %3 : vector<1x512xf32> to vector<2x512xf32>
    %5 = arith.addf %2, %4 : vector<2x512xf32>
    %cst_5 = arith.constant 0.000000e+00 : f32
    %6 = vector.broadcast %cst_5 : f32 to vector<2x512xf32>
    %7 = arith.maximumf %5, %6 : vector<2x512xf32>
    %8 = arith.truncf %7 : vector<2x512xf32> to vector<2x512xbf16>
    %c0_6 = arith.constant 0 : index
    %c0_7 = arith.constant 0 : index
    %9 = vector.load %arg4[%c0_6, %c0_7] : memref<512x10xbf16, #tpu.memory_space<vmem>>, vector<512x10xbf16>
    %cst_8 = arith.constant dense<0.000000e+00> : vector<2x10xf32>
    %10 = tpu.matmul %8, %9, %cst_8 {dimension_numbers = #tpu.dot_dimension_numbers<[1], [0], [0], [1], [0, 0, 1, 1], [], []>} : vector<2x512xbf16>, vector<512x10xbf16>, vector<2x10xf32> -> vector<2x10xf32>
    %11 = vector.shape_cast %10 : vector<2x10xf32> to vector<1x2x10xf32>
    %c0_9 = arith.constant 0 : index
    %c0_10 = arith.constant 0 : index
    %c0_11 = arith.constant 0 : index
    %12 = vector.load %arg5[%c0_9, %c0_10, %c0_11] : memref<1x2x10xf32, #tpu.memory_space<vmem>>, vector<1x2x10xf32>
    tpu.vector_store %arg5[%c0_9, %c0_10, %c0_11], %11 {strides = array<i32>} : memref<1x2x10xf32, #tpu.memory_space<vmem>>, vector<1x2x10xf32>,
    return
  }
  func.func @transform_0(%arg0: i32) -> (i32, i32) {
    %c0_i32 = arith.constant 0 : i32
    %c0_i32_0 = arith.constant 0 : i32
    %c0_i32_1 = arith.constant 0 : i32
    return %c0_i32, %c0_i32_0 : i32, i32
  }
  func.func @transform_1(%arg0: i32) -> (i32, i32) {
    %c0_i32 = arith.constant 0 : i32
    %c0_i32_0 = arith.constant 0 : i32
    return %c0_i32, %arg0 : i32, i32
  }
  func.func @transform_2(%arg0: i32) -> (i32, i32) {
    %c0_i32 = arith.constant 0 : i32
    %c0_i32_0 = arith.constant 0 : i32
    return %c0_i32, %arg0 : i32, i32
  }
  func.func @transform_3(%arg0: i32) -> (i32, i32) {
    %c0_i32 = arith.constant 0 : i32
    %c0_i32_0 = arith.constant 0 : i32
    return %arg0, %c0_i32 : i32, i32
  }
  func.func @transform_4(%arg0: i32) -> (i32, i32, i32) {
    %c0_i32 = arith.constant 0 : i32
    %c0_i32_0 = arith.constant 0 : i32
    %c0_i32_1 = arith.constant 0 : i32
    return %arg0, %c0_i32, %c0_i32_0 : i32, i32, i32
  }
}

</mosaic_0001>

<bundles_post_ra>
// kernel: inception_aux_forward.1
= control target key start
LH: loop header
LB: loop body
LE: loop exit
PB: predicated region body
PF: predicated region fallthrough
CT: control target
= control target key end

     0   :  { %9 = vsyncpa [#allocation3], 0  ;;  %s7026_s0 = inlined_call_operand.vmem [shape: bf16[2,2048], index: 0, kind: input, shape index: {}]   ;;  %s7027_s1 = inlined_call_operand.hbm [shape: bf16[2048,1024], index: 1, kind: input, shape index: {}]   ;;  %s7028_s2 = inlined_call_operand.hbm [shape: f32[1,1024], index: 2, kind: input, shape index: {}]   ;;  %s7029_s3 = inlined_call_operand.vmem [shape: bf16[1024,10], index: 3, kind: input, shape index: {}]   ;;  %s7030_s4 = inlined_call_operand.vmem [shape: f32[2,2,10], index: 4, kind: output, shape index: {}]  }
   0x1   :  { %11 = vsyncpa [#allocation3 + $0x1], 0 }
   0x2   :  { %12 = vsyncpa [#allocation5], 0 }
   0x3   :  { %14 = vsyncpa [#allocation5 + $0x1], 0  ;;  %s6178_s15 = smov 0   ;;  %s6180_s16 = smov 0  }
   0x4   :  { %s6182_s17 = smov 0   ;;  %s6184_s18 = smov 0  }
   0x5 LB: > { %s6197_s19 = sadd.s32 4294967295, %s6145_s18   ;;  %s6200_s20 = sadd.s32 1, %s6145_s18   ;;  %s6145_s18 = sphi %s6184_s18, %s7040_s18   ;;  %s6141_s17 = sphi %s6182_s17, %s7039_s17   ;;  %s6137_s16 = sphi %s6180_s16, %s7038_s16   ;;  %s6133_s15 = sphi %s6178_s15, %s7037_s15  }
   0x6   : > { %s45_s21 = ssub.s32 %s6145_s18, %s6200_s20  ;;  %s48_s22 = sadd.s32 1, %s6141_s17 }
   0x7   : > { %p46_p0 = scmp.eq.s32.totalorder %s45_s21, 0  ;;  %p55_p1 = scmp.ne.s32.totalorder %s6141_s17, %s6137_s16 }
   0x8   : > { %p56_p2 = scmp.eq.s32.totalorder %s6145_s18, 0  ;;  %p61_p3 = scmp.ne.s32.totalorder %s6137_s16, %s6133_s15 }
   0x9   : > { %s6210_s23 = scalar_select %p46_p0, %s6141_s17, %s48_s22  }
   0xa   : > { %p57_p4 = por %p56_p2, %p55_p1  ;;  %p62_p5 = scmp.eq.s32.totalorder %s6197_s19, 0 }
   0xb   : > { %p5211_p6 = scmp.lt.s32.totalorder %s6145_s18, 2  ;;  %s6219_s25 = sand.u32 1, %s6141_s17  }
   0xc   : > { %p6214_p7 = por %p62_p5, %p61_p3  ;;  %s4596_s26 = sshll.u32 %s6219_s25, 12 }
   0xd   : > { %s5154_s27 = sshll.u32 %s6145_s18, 8  ;;  %s170_s5 = scalar_lea.vmem [#allocation2], %s4596_s26 }
   0xe   : > { %s7032_s24 = scalar_select %p6214_p7, 1, 0 }
   0xf   : > { %s6226_s30 = scalar_lea.hbm %s7027_s1, %s5154_s27  ;;  %s177_s6 = sshll.u32 %s170_s5, 4  ;;  %s6228_s6 = int_to_ptr.vmem [resolvable:$true] %s177_s6 }
  0x10   : > { %p6230_p8 = pnand %p5211_p6, %p57_p4  ;;  %s167_s8 = scalar_lea.sflag [#allocation3], %s6219_s25 }
  0x11   : > { %s6051_s9 = scalar_lea.hbm %s6226_s30, 65536  ;;  %s6056_s12 = scalar_lea.hbm %s7027_s1, 131072 }
  0x12   : > { %p6052_p9 = scmp.ne.s32.totalorder %s6226_s30, %s6051_s9  ;;  %p6053_p10 = pneg %p6230_p8 }
  0x13   : > { %p6057_p13 = scmp.lt.s32.totalorder %s6226_s30, %s7027_s1  ;;  %p6058_p0 = scmp.lt.s32.totalorder %s6056_s12, %s6051_s9 }
  0x14   : > { %p6054_p11 = pnand %p6053_p10, %p6052_p9 }
  0x15   : > { %p6059_p1 = por %p6058_p0, %p6057_p13 }
  0x16   : > { %p6055_p12 = pneg %p6054_p11 }
  0x18   : > { %p6060_p2 = pnand %p6059_p1, %p6055_p12 }
  0x1a   : > { %6063 = shalt.err (!%p6060_p2)
}
  0x1b   : > { %s6064_s15 = scalar_lea.vmem %s6228_s6, 65536  ;;  %s6147_s21 = smov [#allocation2]  }
  0x1c   : > { %p6065_p3 = scmp.ne.s32.totalorder %s6228_s6, %s6064_s15  ;;  %s6069_s22 = sshll.u32 %s6147_s21, 4  ;;  %s6070_s22 = int_to_ptr.vmem [resolvable:$false] %s6069_s22 }
  0x1d   : > { %s6071_s26 = scalar_lea.vmem %s6070_s22, 131072  ;;  %p6072_p6 = scmp.lt.s32.totalorder %s6228_s6, %s6070_s22 }
  0x1e   : > { %p6067_p4 = pnand %p6065_p3, %p6053_p10  ;;  %p6073_p9 = scmp.lt.s32.totalorder %s6071_s26, %s6064_s15 }
  0x20   : > { %p6068_p5 = pneg %p6067_p4  ;;  %p6074_p11 = por %p6073_p9, %p6072_p6 }
  0x22   : > { %p6075_p13 = pnand %p6074_p11, %p6068_p5 }
  0x24   : > { %6078 = shalt.err (!%p6075_p13)
}
  0x25   : > { %s6148_s27 = smov 512   ;;  %s6149_s28 = smov 256  }
  0x26   : > { %s6150_s29 = smov 16   ;;  %p4602_p12 = scmp.ge.s32.totalorder %s6145_s18, 1 }
  0x27   : > { %5207 = dma.hbm_to_vmem [thread:$0]  (!%p6230_p8), %s6226_s30, 65536, %s6228_s6, %s167_s8, %s6148_s27, %s6149_s28, %s6150_s29  }
  0x28   : > { %p213_p0 = scmp.lt.s32.totalorder %s6145_s18, 3  ;;  %s4599_s5 = sshll.u32 %s6219_s25, 2 }
  0x29   : > { %s5155_s10 = sshll.u32 %s6145_s18, 6  ;;  %s191_s11 = scalar_lea.vmem [#allocation4], %s4599_s5 }
  0x2a   : > { %p6264_p1 = pnand %p4602_p12, %p213_p0  ;;  %s199_s12 = sshll.u32 %s191_s11, 4  ;;  %s200_s12 = int_to_ptr.vmem [resolvable:$true] %s199_s12 }
  0x2b   : > { %s197_s15 = scalar_lea.hbm %s7028_s2, %s5155_s10  ;;  %s188_s21 = scalar_lea.sflag [#allocation5], %s6219_s25 }
  0x2c   : > { %s7034_s9 = scalar_select %p6264_p1, 1, 0 }
  0x2d   : > { %s6079_s22 = scalar_lea.hbm %s197_s15, 64  ;;  %s6084_s8 = scalar_lea.hbm %s7028_s2, 128 }
  0x2e   : > { %p6080_p2 = scmp.ne.s32.totalorder %s197_s15, %s6079_s22  ;;  %p6085_p5 = scmp.lt.s32.totalorder %s197_s15, %s7028_s2 }
  0x2f   : > { %p6086_p6 = scmp.lt.s32.totalorder %s6084_s8, %s6079_s22 }
  0x30   : > { %p6082_p3 = pnand %p6080_p2, %p6053_p10 }
  0x31   : > { %p6087_p9 = por %p6086_p6, %p6085_p5 }
  0x32   : > { %p6083_p4 = pneg %p6082_p3 }
  0x34   : > { %p6088_p11 = pnand %p6087_p9, %p6083_p4 }
  0x36   : > { %6091 = shalt.err (!%p6088_p11)
}
  0x37   : > { %s6092_s27 = scalar_lea.vmem %s200_s12, 64  ;;  %s6151_s25 = smov [#allocation4]  }
  0x38   : > { %p6093_p13 = scmp.ne.s32.totalorder %s200_s12, %s6092_s27  ;;  %s6097_s28 = sshll.u32 %s6151_s25, 4  ;;  %s6098_s28 = int_to_ptr.vmem [resolvable:$false] %s6097_s28 }
  0x39   : > { %s6099_s29 = scalar_lea.vmem %s6098_s28, 128  ;;  %p6100_p2 = scmp.lt.s32.totalorder %s200_s12, %s6098_s28 }
  0x3a   : > { %p6095_p12 = pnand %p6093_p13, %p6053_p10  ;;  %p6101_p3 = scmp.lt.s32.totalorder %s6099_s29, %s6092_s27 }
  0x3c   : > { %p6096_p0 = pneg %p6095_p12  ;;  %p6102_p7 = por %p6101_p3, %p6100_p2 }
  0x3e   : > { %p6103_p1 = pnand %p6102_p7, %p6096_p0 }
  0x40   : > { %6106 = shalt.err (!%p6103_p1)
}
  0x41   : > { %5210 = dma.hbm_to_vmem [thread:$0]  (!%p6230_p8), %s197_s15, 64, %s200_s12, %s188_s21  }
  0x42   : > { %p7035_p4 = scmp.ne.s32.totalorder %s7034_s9, 0 }
  0x43   : > { %s219_s5 = sand.u32 (!%p7035_p4), 1, %s6137_s16   ;;  %p7036_p10 = scmp.ne.s32.totalorder (!%p7035_p4), %s7032_s24, 0 }
  0x44   : > { %217 = sbr.rel (%p7035_p4) target bundleno = 994 (0x3e2), region = 36  ;;  %s4603_s10 = sshll.u32 (!%p7035_p4), %s219_s5, 12 }
  0x45   : > { %s220_s11 = scalar_lea.sflag (!%p7035_p4), [#allocation3], %s219_s5  ;;  %s6290_s13 = scalar_lea.vmem (!%p7035_p4), [#allocation2], %s4603_s10 }
  0x49   : > { %6124 = dma.done.wait (%p7036_p10), %s220_s11, 65536  }
  0x4a   : > { %6126 = vsyncadd (%p7036_p10), %s220_s11, 4294901760  ;;  %s4604_s14 = sshll.u32 %s219_s5, 2  ;;  %s229_s22 = scalar_lea.sflag [#allocation5], %s219_s5 }
  0x4b   : > { %s6296_s7 = scalar_lea.vmem [#allocation4], %s4604_s14 }
  0x4c   : > { %6128 = dma.done.wait (%p7036_p10), %s229_s22, 64  }
  0x4d   : > { %6130 = vsyncadd (%p7036_p10), %s229_s22, 4294967232  ;;  %v5248_v0 = vld [vmem:[%s6290_s13 + $0xe4] ss:$16 sps:$4 sm:$0xff]   ;;  %v5252_v2 = vld [vmem:[%s6290_s13 + $0xe0] ss:$16 sps:$4 sm:$0xff]   ;;  %v795_v36 = vlaneseq  ;;  %s4605_s21 = sshll.u32 %s6197_s19, 6 }
  0x4e   : > { %v5250_v1 = vld [vmem:[%s6290_s13 + $0x2e4] ss:$16 sps:$4 sm:$0xff]   ;;  %3491 = vmatprep.subr.bf16.mxu0 %v5248_v0  ;;  %v5253_v3 = vld [vmem:[%s6290_s13 + $0x2e0] ss:$16 sps:$4 sm:$0xff]   ;;  %v6152_v37 = vmov 1966171168  }
  0x4f   : > { %3532 = vmatprep.subr.bf16.mxu1 %v5250_v1  ;;  %v5254_v4 = vld [vmem:[%s6290_s13 + $0xc4] ss:$16 sps:$4 sm:$0xff]   ;;  %3492 = vmatpush1.bf16.msra.mxu0 %v5252_v2  ;;  %v5258_v6 = vld [vmem:[%s6290_s13 + $0xc0] ss:$16 sps:$4 sm:$0xff]   ;;  %v819_v38 = vunpack.c.l.s4 %v6152_v37  ;;  %v6341_v42 = vshrl.u32 %v795_v36, 7  ;;  %p269_p7 = scmp.lt.s32.totalorder %s4605_s21, 127 }
  0x50   : > { %3533 = vmatpush1.bf16.msra.mxu1 %v5253_v3  ;;  %v5256_v5 = vld [vmem:[%s6290_s13 + $0x2c4] ss:$16 sps:$4 sm:$0xff]   ;;  %3493 = vmatprep.subr.bf16.mxu0 %v5254_v4  ;;  %v5259_v7 = vld [vmem:[%s6290_s13 + $0x2c0] ss:$16 sps:$4 sm:$0xff]   ;;  %p274_p8 = scmp.lt.s32.totalorder %s6197_s19, 1  ;;  %vm4491_vm0 = vcmask 74752  }
  0x51   : > { %3534 = vmatprep.subr.bf16.mxu1 %v5256_v5  ;;  %v5260_v8 = vld [vmem:[%s6290_s13 + $0xa4] ss:$16 sps:$4 sm:$0xff]   ;;  %v5264_v10 = vld [vmem:[%s6290_s13 + $0xa0] ss:$16 sps:$4 sm:$0xff]   ;;  %v820_v43 = vunpack.c.0.s8 %v819_v38  ;;  %s7042_s21 = smov (!%p269_p7, %s4605_s21), 127 }
  0x52   : > { %v5262_v9 = vld [vmem:[%s6290_s13 + $0x2a4] ss:$16 sps:$4 sm:$0xff]   ;;  %v5265_v11 = vld [vmem:[%s6290_s13 + $0x2a0] ss:$16 sps:$4 sm:$0xff]   ;;  %s4606_s30 = sshll.u32 %s7042_s21, 2  ;;  %s7044_s19 = smov (!%p274_p8, %s6197_s19), 1 }
  0x53   : > { %3494 = vmatpush1.bf16.msra.mxu0 %v5258_v6  ;;  %v5266_v12 = vld [vmem:[%s6290_s13 + $0x84] ss:$16 sps:$4 sm:$0xff]   ;;  %v5270_v14 = vld [vmem:[%s6290_s13 + $0x80] ss:$16 sps:$4 sm:$0xff]   ;;  %v6349_v49 = vsub.s32 %v820_v43, %v6341_v42  ;;  %s6821_s26 = scalar_lea.vmem %s7029_s3, %s4606_s30  ;;  %s4607_s18 = sshll.u32 %s7044_s19, 1 }
  0x54   : > { %3535 = vmatpush1.bf16.msra.mxu1 %v5259_v7  ;;  %3495 = vmatprep.subr.bf16.mxu0 %v5260_v8  ;;  %v5268_v13 = vld [vmem:[%s6290_s13 + $0x284] ss:$16 sps:$4 sm:$0xff]   ;;  %v5271_v15 = vld [vmem:[%s6290_s13 + $0x280] ss:$16 sps:$4 sm:$0xff]   ;;  %s277_s28 = scalar_lea.vmem %s7030_s4, %s4607_s18 }
  0x55   : > { %3536 = vmatprep.subr.bf16.mxu1 %v5262_v9  ;;  %v5272_v16 = vld [vmem:[%s6290_s13 + $0x64] ss:$16 sps:$4 sm:$0xff]   ;;  %v5276_v18 = vld [vmem:[%s6290_s13 + $0x60] ss:$16 sps:$4 sm:$0xff]  }
  0x56   : > { %v5274_v17 = vld [vmem:[%s6290_s13 + $0x264] ss:$16 sps:$4 sm:$0xff]   ;;  %v5277_v19 = vld [vmem:[%s6290_s13 + $0x260] ss:$16 sps:$4 sm:$0xff]  }
  0x57   : > { %3496 = vmatpush1.bf16.msra.mxu0 %v5264_v10  ;;  %v5278_v20 = vld [vmem:[%s6290_s13 + $0x44] ss:$16 sps:$4 sm:$0xff]   ;;  %v5282_v22 = vld [vmem:[%s6290_s13 + $0x40] ss:$16 sps:$4 sm:$0xff]  }
  0x58   : > { %3537 = vmatpush1.bf16.msra.mxu1 %v5265_v11  ;;  %3497 = vmatprep.subr.bf16.mxu0 %v5266_v12  ;;  %v5280_v21 = vld [vmem:[%s6290_s13 + $0x244] ss:$16 sps:$4 sm:$0xff]   ;;  %v5283_v23 = vld [vmem:[%s6290_s13 + $0x240] ss:$16 sps:$4 sm:$0xff]  }
  0x59   : > { %3538 = vmatprep.subr.bf16.mxu1 %v5268_v13  ;;  %v5284_v24 = vld [vmem:[%s6290_s13 + $0x24] ss:$16 sps:$4 sm:$0xff]   ;;  %v5288_v26 = vld [vmem:[%s6290_s13 + $0x20] ss:$16 sps:$4 sm:$0xff]  }
  0x5a   : > { %v5286_v25 = vld [vmem:[%s6290_s13 + $0x224] ss:$16 sps:$4 sm:$0xff]   ;;  %v5289_v27 = vld [vmem:[%s6290_s13 + $0x220] ss:$16 sps:$4 sm:$0xff]  }
  0x5b   : > { %3498 = vmatpush1.bf16.msra.mxu0 %v5270_v14  ;;  %v5290_v28 = vld [vmem:[%s6290_s13 + $0x4] ss:$16 sps:$4 sm:$0xff]   ;;  %v5294_v30 = vld [vmem:[%s6290_s13] ss:$16 sps:$4 sm:$0xff]  }
  0x5c   : > { %3539 = vmatpush1.bf16.msra.mxu1 %v5271_v15  ;;  %3499 = vmatprep.subr.bf16.mxu0 %v5272_v16  ;;  %v5292_v29 = vld [vmem:[%s6290_s13 + $0x204] ss:$16 sps:$4 sm:$0xff]   ;;  %v5295_v31 = vld [vmem:[%s6290_s13 + $0x200] ss:$16 sps:$4 sm:$0xff]  }
  0x5d   : > { %3540 = vmatprep.subr.bf16.mxu1 %v5274_v17  ;;  %v5296_v32 = vld [vmem:[%s6290_s13 + $0x1e4] ss:$16 sps:$4 sm:$0xff]   ;;  %v5300_v34 = vld [vmem:[%s6290_s13 + $0x1e0] ss:$16 sps:$4 sm:$0xff]  }
  0x5e   : > { %v5298_v33 = vld [vmem:[%s6290_s13 + $0x3e4] ss:$16 sps:$4 sm:$0xff]   ;;  %v5301_v35 = vld [vmem:[%s6290_s13 + $0x3e0] ss:$16 sps:$4 sm:$0xff]  }
  0x5f   : > { %3500 = vmatpush1.bf16.msra.mxu0 %v5276_v18  ;;  %v5302_v39 = vld [vmem:[%s6290_s13 + $0x1c4] ss:$16 sps:$4 sm:$0xff]   ;;  %v5306_v41 = vld [vmem:[%s6290_s13 + $0x1c0] ss:$16 sps:$4 sm:$0xff]  }
  0x60   : > { %3541 = vmatpush1.bf16.msra.mxu1 %v5277_v19  ;;  %3501 = vmatprep.subr.bf16.mxu0 %v5278_v20  ;;  %v5304_v40 = vld [vmem:[%s6290_s13 + $0x3c4] ss:$16 sps:$4 sm:$0xff]   ;;  %v5307_v44 = vld [vmem:[%s6290_s13 + $0x3c0] ss:$16 sps:$4 sm:$0xff]  }
  0x61   : > { %3542 = vmatprep.subr.bf16.mxu1 %v5280_v21  ;;  %v5308_v45 = vld [vmem:[%s6290_s13 + $0x1a4] ss:$16 sps:$4 sm:$0xff]   ;;  %v5312_v47 = vld [vmem:[%s6290_s13 + $0x1a0] ss:$16 sps:$4 sm:$0xff]  }
  0x62   : > { %v5310_v46 = vld [vmem:[%s6290_s13 + $0x3a4] ss:$16 sps:$4 sm:$0xff]   ;;  %v5313_v48 = vld [vmem:[%s6290_s13 + $0x3a0] ss:$16 sps:$4 sm:$0xff]  }
  0x63   : > { %3502 = vmatpush1.bf16.msra.mxu0 %v5282_v22  ;;  %v5314_v50 = vld [vmem:[%s6290_s13 + $0x184] ss:$16 sps:$4 sm:$0xff]   ;;  %v5318_v53 = vld [vmem:[%s6290_s13 + $0x180] ss:$16 sps:$4 sm:$0xff]  }
  0x64   : > { %3543 = vmatpush1.bf16.msra.mxu1 %v5283_v23  ;;  %3503 = vmatprep.subr.bf16.mxu0 %v5284_v24  ;;  %v5316_v51 = vld [vmem:[%s6290_s13 + $0x384] ss:$16 sps:$4 sm:$0xff]   ;;  %v5319_v55 = vld [vmem:[%s6290_s13 + $0x380] ss:$16 sps:$4 sm:$0xff]  }
  0x65   : > { %3544 = vmatprep.subr.bf16.mxu1 %v5286_v25  ;;  %v279_v52 = vld [vmem:[%s7026_s0] sm:$0xff] }
  0x66   : > { %v824_v54 = vrot.slane %v279_v52, %v6349_v49  ;;  %v5320_v56 = vld [vmem:[%s6290_s13 + $0x164] ss:$16 sps:$4 sm:$0xff]   ;;  %v5324_v59 = vld [vmem:[%s6290_s13 + $0x160] ss:$16 sps:$4 sm:$0xff]   ;;  %v817_v1 = vcombine.high %v279_v52, %v279_v52 }
  0x67   : > { %3504 = vmatpush1.bf16.msra.mxu0 %v5288_v26  ;;  %v5322_v57 = vld [vmem:[%s6290_s13 + $0x364] ss:$16 sps:$4 sm:$0xff]   ;;  %v5325_v61 = vld [vmem:[%s6290_s13 + $0x360] ss:$16 sps:$4 sm:$0xff]  }
  0x68   : > { %3545 = vmatpush1.bf16.msra.mxu1 %v5289_v27  ;;  %3505 = vmatprep.subr.bf16.mxu0 %v5290_v28  ;;  %v832_v58 = vcombine.high %v824_v54, %v824_v54  ;;  %v5326_v62 = vld [vmem:[%s6290_s13 + $0x144] ss:$16 sps:$4 sm:$0xff]   ;;  %v5330_v2 = vld [vmem:[%s6290_s13 + $0x140] ss:$16 sps:$4 sm:$0xff]   ;;  %v6379_v6 = vrot.slane %v817_v1, %v6349_v49  ;;  %v6389_v13 = vrot.slane %v824_v54, %v6349_v49 }
  0x69   : > { %3546 = vmatprep.subr.bf16.mxu1 %v5292_v29  ;;  %v5328_v63 = vld [vmem:[%s6290_s13 + $0x344] ss:$16 sps:$4 sm:$0xff]   ;;  %v5331_v3 = vld [vmem:[%s6290_s13 + $0x340] ss:$16 sps:$4 sm:$0xff]  }
  0x6a   : > { %v6363_v60 = vrot.slane %v832_v58, %v6349_v49  ;;  %v5332_v4 = vld [vmem:[%s6290_s13 + $0x124] ss:$16 sps:$4 sm:$0xff]   ;;  %v5336_v7 = vld [vmem:[%s6290_s13 + $0x120] ss:$16 sps:$4 sm:$0xff]   ;;  %v833_v11 = vcombine.high %v6379_v6, %v6379_v6  ;;  %v6399_v18 = vcombine.high %v6389_v13, %v6389_v13 }
  0x6b   : > { %3506 = vmatpush1.bf16.msra.mxu0 %v5294_v30  ;;  %v5334_v5 = vld [vmem:[%s6290_s13 + $0x324] ss:$16 sps:$4 sm:$0xff]   ;;  %v5337_v8 = vld [vmem:[%s6290_s13 + $0x320] ss:$16 sps:$4 sm:$0xff]  }
  0x6c   : > { %3547 = vmatpush1.bf16.msra.mxu1 %v5295_v31  ;;  %3507 = vmatprep.subr.bf16.mxu0 %v5296_v32  ;;  %v6370_v0 = vcombine.high %v6363_v60, %v6363_v60  ;;  %v5338_v9 = vld [vmem:[%s6290_s13 + $0x104] ss:$16 sps:$4 sm:$0xff]   ;;  %v5342_v12 = vld [vmem:[%s6290_s13 + $0x100] ss:$16 sps:$4 sm:$0xff]   ;;  %v6395_v17 = vrot.slane %v833_v11, %v6349_v49 }
  0x6d   : > { %3548 = vmatprep.subr.bf16.mxu1 %v5298_v33  ;;  %3523 = vmatprep.mubr.bf16.mxu0 %v6363_v60  ;;  %v5340_v10 = vld [vmem:[%s6290_s13 + $0x304] ss:$16 sps:$4 sm:$0xff]   ;;  %v5343_v14 = vld [vmem:[%s6290_s13 + $0x300] ss:$16 sps:$4 sm:$0xff]  }
  0x6e   : > { %3564 = vmatprep.mubr.bf16.mxu1 %v6370_v0  ;;  %v5346_v15 = vld [vmem:[%s6290_s13 + $0x4e4] ss:$16 sps:$4 sm:$0xff]   ;;  %v5344_v19 = vld [vmem:[%s6290_s13 + $0x4e0] ss:$16 sps:$4 sm:$0xff]   ;;  %v6407_v23 = vcombine.high %v6395_v17, %v6395_v17 }
  0x6f   : > { %3508 = vmatpush2.bf16.msra.mxu0 %v5300_v34  ;;  %v5349_v16 = vld [vmem:[%s6290_s13 + $0x6e4] ss:$16 sps:$4 sm:$0xff]   ;;  %v5347_v20 = vld [vmem:[%s6290_s13 + $0x6e0] ss:$16 sps:$4 sm:$0xff]  }
  0x70   : > { %3549 = vmatpush2.bf16.msra.mxu1 %v5301_v35  ;;  %3509 = vmatprep.subr.bf16.mxu0 %v5302_v39  ;;  %v5352_v21 = vld [vmem:[%s6290_s13 + $0x4c4] ss:$16 sps:$4 sm:$0xff]   ;;  %v5350_v24 = vld [vmem:[%s6290_s13 + $0x4c0] ss:$16 sps:$4 sm:$0xff]  }
  0x71   : > { %3550 = vmatprep.subr.bf16.mxu1 %v5304_v40  ;;  %v5355_v22 = vld [vmem:[%s6290_s13 + $0x6c4] ss:$16 sps:$4 sm:$0xff]   ;;  %v5353_v25 = vld [vmem:[%s6290_s13 + $0x6c0] ss:$16 sps:$4 sm:$0xff]  }
  0x72   : > { %v5358_v26 = vld [vmem:[%s6290_s13 + $0x4a4] ss:$16 sps:$4 sm:$0xff]   ;;  %v5356_v28 = vld [vmem:[%s6290_s13 + $0x4a0] ss:$16 sps:$4 sm:$0xff]  }
  0x73   : > { %3510 = vmatpush2.bf16.msra.mxu0 %v5306_v41  ;;  %v5361_v27 = vld [vmem:[%s6290_s13 + $0x6a4] ss:$16 sps:$4 sm:$0xff]   ;;  %v5359_v29 = vld [vmem:[%s6290_s13 + $0x6a0] ss:$16 sps:$4 sm:$0xff]  }
  0x74   : > { %3551 = vmatpush2.bf16.msra.mxu1 %v5307_v44  ;;  %3511 = vmatprep.subr.bf16.mxu0 %v5308_v45  ;;  %v5364_v30 = vld [vmem:[%s6290_s13 + $0x484] ss:$16 sps:$4 sm:$0xff]   ;;  %v5362_v32 = vld [vmem:[%s6290_s13 + $0x480] ss:$16 sps:$4 sm:$0xff]  }
  0x75   : > { %3552 = vmatprep.subr.bf16.mxu1 %v5310_v46  ;;  %v5367_v31 = vld [vmem:[%s6290_s13 + $0x684] ss:$16 sps:$4 sm:$0xff]   ;;  %v5365_v33 = vld [vmem:[%s6290_s13 + $0x680] ss:$16 sps:$4 sm:$0xff]  }
  0x76   : > { %v5370_v34 = vld [vmem:[%s6290_s13 + $0x464] ss:$16 sps:$4 sm:$0xff]   ;;  %v5368_v36 = vld [vmem:[%s6290_s13 + $0x460] ss:$16 sps:$4 sm:$0xff]  }
  0x77   : > { %3512 = vmatpush2.bf16.msra.mxu0 %v5312_v47  ;;  %v5373_v35 = vld [vmem:[%s6290_s13 + $0x664] ss:$16 sps:$4 sm:$0xff]   ;;  %v5371_v37 = vld [vmem:[%s6290_s13 + $0x660] ss:$16 sps:$4 sm:$0xff]  }
  0x78   : > { %3553 = vmatpush2.bf16.msra.mxu1 %v5313_v48  ;;  %3513 = vmatprep.subr.bf16.mxu0 %v5314_v50  ;;  %v5376_v38 = vld [vmem:[%s6290_s13 + $0x444] ss:$16 sps:$4 sm:$0xff]   ;;  %v5374_v40 = vld [vmem:[%s6290_s13 + $0x440] ss:$16 sps:$4 sm:$0xff]  }
  0x79   : > { %3554 = vmatprep.subr.bf16.mxu1 %v5316_v51  ;;  %v5379_v39 = vld [vmem:[%s6290_s13 + $0x644] ss:$16 sps:$4 sm:$0xff]   ;;  %v5377_v41 = vld [vmem:[%s6290_s13 + $0x640] ss:$16 sps:$4 sm:$0xff]  }
  0x7a   : > { %v5382_v43 = vld [vmem:[%s6290_s13 + $0x424] ss:$16 sps:$4 sm:$0xff]   ;;  %v5380_v45 = vld [vmem:[%s6290_s13 + $0x420] ss:$16 sps:$4 sm:$0xff]  }
  0x7b   : > { %3514 = vmatpush2.bf16.msra.mxu0 %v5318_v53  ;;  %v5385_v44 = vld [vmem:[%s6290_s13 + $0x624] ss:$16 sps:$4 sm:$0xff]   ;;  %v5383_v46 = vld [vmem:[%s6290_s13 + $0x620] ss:$16 sps:$4 sm:$0xff]  }
  0x7c   : > { %3555 = vmatpush2.bf16.msra.mxu1 %v5319_v55  ;;  %3515 = vmatprep.subr.bf16.mxu0 %v5320_v56  ;;  %v5388_v47 = vld [vmem:[%s6290_s13 + $0x404] ss:$16 sps:$4 sm:$0xff]   ;;  %v5386_v50 = vld [vmem:[%s6290_s13 + $0x400] ss:$16 sps:$4 sm:$0xff]  }
  0x7d   : > { %3556 = vmatprep.subr.bf16.mxu1 %v5322_v57  ;;  %v5391_v48 = vld [vmem:[%s6290_s13 + $0x604] ss:$16 sps:$4 sm:$0xff]   ;;  %v5389_v51 = vld [vmem:[%s6290_s13 + $0x600] ss:$16 sps:$4 sm:$0xff]  }
  0x7e   : > { %v5394_v52 = vld [vmem:[%s6290_s13 + $0x5e4] ss:$16 sps:$4 sm:$0xff]   ;;  %v5392_v54 = vld [vmem:[%s6290_s13 + $0x5e0] ss:$16 sps:$4 sm:$0xff]  }
  0x7f   : > { %3516 = vmatpush2.bf16.msra.mxu0 %v5324_v59  ;;  %v5397_v53 = vld [vmem:[%s6290_s13 + $0x7e4] ss:$16 sps:$4 sm:$0xff]   ;;  %v5395_v55 = vld [vmem:[%s6290_s13 + $0x7e0] ss:$16 sps:$4 sm:$0xff]  }
  0x80   : > { %3557 = vmatpush2.bf16.msra.mxu1 %v5325_v61  ;;  %3517 = vmatprep.subr.bf16.mxu0 %v5326_v62  ;;  %v5400_v56 = vld [vmem:[%s6290_s13 + $0x5c4] ss:$16 sps:$4 sm:$0xff]   ;;  %v5398_v58 = vld [vmem:[%s6290_s13 + $0x5c0] ss:$16 sps:$4 sm:$0xff]  }
  0x81   : > { %3558 = vmatprep.subr.bf16.mxu1 %v5328_v63  ;;  %v5403_v57 = vld [vmem:[%s6290_s13 + $0x7c4] ss:$16 sps:$4 sm:$0xff]   ;;  %v5401_v59 = vld [vmem:[%s6290_s13 + $0x7c0] ss:$16 sps:$4 sm:$0xff]  }
  0x82   : > { %v5406_v61 = vld [vmem:[%s6290_s13 + $0x5a4] ss:$16 sps:$4 sm:$0xff]   ;;  %v5404_v63 = vld [vmem:[%s6290_s13 + $0x5a0] ss:$16 sps:$4 sm:$0xff]  }
  0x83   : > { %3518 = vmatpush2.bf16.msra.mxu0 %v5330_v2  ;;  %v5409_v62 = vld [vmem:[%s6290_s13 + $0x7a4] ss:$16 sps:$4 sm:$0xff]   ;;  %v5407_v1 = vld [vmem:[%s6290_s13 + $0x7a0] ss:$16 sps:$4 sm:$0xff]  }
  0x84   : > { %3559 = vmatpush2.bf16.msra.mxu1 %v5331_v3  ;;  %3519 = vmatprep.subr.bf16.mxu0 %v5332_v4  ;;  %v5412_v2 = vld [vmem:[%s6290_s13 + $0x584] ss:$16 sps:$4 sm:$0xff]   ;;  %v5410_v4 = vld [vmem:[%s6290_s13 + $0x580] ss:$16 sps:$4 sm:$0xff]  }
  0x85   : > { %3560 = vmatprep.subr.bf16.mxu1 %v5334_v5  ;;  %v5415_v3 = vld [vmem:[%s6290_s13 + $0x784] ss:$16 sps:$4 sm:$0xff]   ;;  %v5413_v5 = vld [vmem:[%s6290_s13 + $0x780] ss:$16 sps:$4 sm:$0xff]  }
  0x86   : > { %v5424_v11 = vld [vmem:[%s6290_s13 + $0x544] ss:$16 sps:$4 sm:$0xff]  }
  0x87   : > { %3520 = vmatpush2.bf16.msra.mxu0 %v5336_v7  ;;  %v5418_v7 = vld [vmem:[%s6290_s13 + $0x564] ss:$16 sps:$4 sm:$0xff]  }
  0x88   : > { %3561 = vmatpush2.bf16.msra.mxu1 %v5337_v8  ;;  %3521 = vmatprep.subr.bf16.mxu0 %v5338_v9  ;;  %v5421_v8 = vld [vmem:[%s6290_s13 + $0x764] ss:$16 sps:$4 sm:$0xff]   ;;  %v5416_v9 = vld [vmem:[%s6290_s13 + $0x560] ss:$16 sps:$4 sm:$0xff]  }
  0x89   : > { %3562 = vmatprep.subr.bf16.mxu1 %v5340_v10  ;;  %v5419_v10 = vld [vmem:[%s6290_s13 + $0x760] ss:$16 sps:$4 sm:$0xff]  }
  0x8b   : > { %3522 = vmatpush2.bf16.msra.mxu0 %v5342_v12  ;;  %v5427_v12 = vld [vmem:[%s6290_s13 + $0x744] ss:$16 sps:$4 sm:$0xff]  }
  0x8c   : > { %3563 = vmatpush2.bf16.msra.mxu1 %v5343_v14  ;;  %3573 = vmatprep.subr.bf16.mxu0 %v5346_v15  ;;  %v5422_v14 = vld [vmem:[%s6290_s13 + $0x540] ss:$16 sps:$4 sm:$0xff]  }
  0x8d   : > { %3614 = vmatprep.subr.bf16.mxu1 %v5349_v16  ;;  %v5425_v15 = vld [vmem:[%s6290_s13 + $0x740] ss:$16 sps:$4 sm:$0xff]   ;;  %v5430_v16 = vld [vmem:[%s6290_s13 + $0x524] ss:$16 sps:$4 sm:$0xff]  }
  0x8e   : > { %3524 = vmatmul.mubr.bf16.vlgmr.msra.gmra.mxu0 %v6389_v13 }
  0x8f   : > { %3565 = vmatmul.mubr.bf16.vlgmr.msra.gmra.mxu1 %v6399_v18  ;;  %3574 = vmatpush1.bf16.msra.mxu0 %v5344_v19  ;;  %v5433_v19 = vld [vmem:[%s6290_s13 + $0x724] ss:$16 sps:$4 sm:$0xff]  }
  0x90   : > { %3615 = vmatpush1.bf16.msra.mxu1 %v5347_v20  ;;  %3575 = vmatprep.subr.bf16.mxu0 %v5352_v21  ;;  %v5428_v20 = vld [vmem:[%s6290_s13 + $0x520] ss:$16 sps:$4 sm:$0xff]  }
  0x91   : > { %3616 = vmatprep.subr.bf16.mxu1 %v5355_v22  ;;  %3605 = vmatprep.mubr.bf16.mxu0 %v6395_v17  ;;  %v5431_v21 = vld [vmem:[%s6290_s13 + $0x720] ss:$16 sps:$4 sm:$0xff]   ;;  %v5436_v22 = vld [vmem:[%s6290_s13 + $0x504] ss:$16 sps:$4 sm:$0xff]  }
  0x92   : > { %3646 = vmatprep.mubr.bf16.mxu1 %v6407_v23 }
  0x93   : > { %3576 = vmatpush1.bf16.msra.mxu0 %v5350_v24  ;;  %v5439_v24 = vld [vmem:[%s6290_s13 + $0x704] ss:$16 sps:$4 sm:$0xff]  }
  0x94   : > { %3617 = vmatpush1.bf16.msra.mxu1 %v5353_v25  ;;  %3577 = vmatprep.subr.bf16.mxu0 %v5358_v26  ;;  %v5434_v25 = vld [vmem:[%s6290_s13 + $0x500] ss:$16 sps:$4 sm:$0xff]   ;;  %v6472_v26 = vrot.slane %v6379_v6, %v6349_v49 }
  0x95   : > { %3618 = vmatprep.subr.bf16.mxu1 %v5361_v27  ;;  %v5437_v27 = vld [vmem:[%s6290_s13 + $0x700] ss:$16 sps:$4 sm:$0xff]  }
  0x96   : > { %v5444_v6 = vld [vmem:[%s6290_s13 + $0xae0] ss:$16 sps:$4 sm:$0xff]  }
  0x97   : > { %3578 = vmatpush1.bf16.msra.mxu0 %v5356_v28  ;;  %v5443_v28 = vld [vmem:[%s6290_s13 + $0x8e4] ss:$16 sps:$4 sm:$0xff]  }
  0x98   : > { %3619 = vmatpush1.bf16.msra.mxu1 %v5359_v29  ;;  %3579 = vmatprep.subr.bf16.mxu0 %v5364_v30  ;;  %v5446_v29 = vld [vmem:[%s6290_s13 + $0xae4] ss:$16 sps:$4 sm:$0xff]   ;;  %v6479_v30 = vcombine.high %v6472_v26, %v6472_v26 }
  0x99   : > { %3620 = vmatprep.subr.bf16.mxu1 %v5367_v31  ;;  %v5441_v31 = vld [vmem:[%s6290_s13 + $0x8e0] ss:$16 sps:$4 sm:$0xff]  }
  0x9b   : > { %3580 = vmatpush1.bf16.msra.mxu0 %v5362_v32  ;;  %v6486_v32 = vld [vmem:[%s7026_s0 + $0x8] sm:$0xff] }
  0x9c   : > { %3621 = vmatpush1.bf16.msra.mxu1 %v5365_v33  ;;  %3581 = vmatprep.subr.bf16.mxu0 %v5370_v34  ;;  %v5449_v33 = vld [vmem:[%s6290_s13 + $0x8c4] ss:$16 sps:$4 sm:$0xff]  }
  0x9d   : > { %3622 = vmatprep.subr.bf16.mxu1 %v5373_v35  ;;  %v5452_v34 = vld [vmem:[%s6290_s13 + $0xac4] ss:$16 sps:$4 sm:$0xff]   ;;  %v6492_v35 = vrot.slane %v6486_v32, %v6349_v49 }
  0x9f   : > { %3582 = vmatpush1.bf16.msra.mxu0 %v5368_v36  ;;  %v881_v36 = vcombine.high %v6492_v35, %v6492_v35 }
  0xa0   : > { %3623 = vmatpush1.bf16.msra.mxu1 %v5371_v37  ;;  %3583 = vmatprep.subr.bf16.mxu0 %v5376_v38  ;;  %v5447_v37 = vld [vmem:[%s6290_s13 + $0x8c0] ss:$16 sps:$4 sm:$0xff]  }
  0xa1   : > { %3624 = vmatprep.subr.bf16.mxu1 %v5379_v39  ;;  %v5450_v38 = vld [vmem:[%s6290_s13 + $0xac0] ss:$16 sps:$4 sm:$0xff]   ;;  %v5455_v39 = vld [vmem:[%s6290_s13 + $0x8a4] ss:$16 sps:$4 sm:$0xff]  }
  0xa3   : > { %3584 = vmatpush1.bf16.msra.mxu0 %v5374_v40  ;;  %v5458_v40 = vld [vmem:[%s6290_s13 + $0xaa4] ss:$16 sps:$4 sm:$0xff]  }
  0xa4   : > { %3625 = vmatpush1.bf16.msra.mxu1 %v5377_v41  ;;  %3585 = vmatprep.subr.bf16.mxu0 %v5382_v43  ;;  %v6503_v41 = vrot.slane %v881_v36, %v6349_v49  ;;  %v5519_v36 = vld [vmem:[%s6290_s13 + $0x940] ss:$16 sps:$4 sm:$0xff]  }
  0xa5   : > { %3626 = vmatprep.subr.bf16.mxu1 %v5385_v44  ;;  %v5453_v44 = vld [vmem:[%s6290_s13 + $0x8a0] ss:$16 sps:$4 sm:$0xff]  }
  0xa6   : > { %v6508_v43 = vcombine.high %v6503_v41, %v6503_v41 }
  0xa7   : > { %3586 = vmatpush1.bf16.msra.mxu0 %v5380_v45  ;;  %v5456_v45 = vld [vmem:[%s6290_s13 + $0xaa0] ss:$16 sps:$4 sm:$0xff]  }
  0xa8   : > { %3627 = vmatpush1.bf16.msra.mxu1 %v5383_v46  ;;  %3587 = vmatprep.subr.bf16.mxu0 %v5388_v47  ;;  %v5461_v46 = vld [vmem:[%s6290_s13 + $0x884] ss:$16 sps:$4 sm:$0xff]  }
  0xa9   : > { %3628 = vmatprep.subr.bf16.mxu1 %v5391_v48  ;;  %v5464_v47 = vld [vmem:[%s6290_s13 + $0xa84] ss:$16 sps:$4 sm:$0xff]   ;;  %v5459_v48 = vld [vmem:[%s6290_s13 + $0x880] ss:$16 sps:$4 sm:$0xff]  }
  0xab   : > { %3588 = vmatpush1.bf16.msra.mxu0 %v5386_v50  ;;  %v5462_v50 = vld [vmem:[%s6290_s13 + $0xa80] ss:$16 sps:$4 sm:$0xff]  }
  0xac   : > { %3629 = vmatpush1.bf16.msra.mxu1 %v5389_v51  ;;  %3589 = vmatprep.subr.bf16.mxu0 %v5394_v52  ;;  %v5467_v51 = vld [vmem:[%s6290_s13 + $0x864] ss:$16 sps:$4 sm:$0xff]  }
  0xad   : > { %3630 = vmatprep.subr.bf16.mxu1 %v5397_v53  ;;  %v5470_v52 = vld [vmem:[%s6290_s13 + $0xa64] ss:$16 sps:$4 sm:$0xff]   ;;  %v5465_v53 = vld [vmem:[%s6290_s13 + $0x860] ss:$16 sps:$4 sm:$0xff]  }
  0xaf   : > { %3590 = vmatpush2.bf16.msra.mxu0 %v5392_v54  ;;  %v5468_v54 = vld [vmem:[%s6290_s13 + $0xa60] ss:$16 sps:$4 sm:$0xff]  }
  0xb0   : > { %3631 = vmatpush2.bf16.msra.mxu1 %v5395_v55  ;;  %3591 = vmatprep.subr.bf16.mxu0 %v5400_v56  ;;  %v5473_v55 = vld [vmem:[%s6290_s13 + $0x844] ss:$16 sps:$4 sm:$0xff]  }
  0xb1   : > { %3632 = vmatprep.subr.bf16.mxu1 %v5403_v57  ;;  %v5476_v56 = vld [vmem:[%s6290_s13 + $0xa44] ss:$16 sps:$4 sm:$0xff]   ;;  %v5471_v57 = vld [vmem:[%s6290_s13 + $0x840] ss:$16 sps:$4 sm:$0xff]  }
  0xb3   : > { %3592 = vmatpush2.bf16.msra.mxu0 %v5398_v58  ;;  %v5474_v58 = vld [vmem:[%s6290_s13 + $0xa40] ss:$16 sps:$4 sm:$0xff]  }
  0xb4   : > { %3633 = vmatpush2.bf16.msra.mxu1 %v5401_v59  ;;  %3593 = vmatprep.subr.bf16.mxu0 %v5406_v61  ;;  %v5479_v59 = vld [vmem:[%s6290_s13 + $0x824] ss:$16 sps:$4 sm:$0xff]  }
  0xb5   : > { %3634 = vmatprep.subr.bf16.mxu1 %v5409_v62  ;;  %v5482_v61 = vld [vmem:[%s6290_s13 + $0xa24] ss:$16 sps:$4 sm:$0xff]   ;;  %v5477_v62 = vld [vmem:[%s6290_s13 + $0x820] ss:$16 sps:$4 sm:$0xff]  }
  0xb7   : > { %3594 = vmatpush2.bf16.msra.mxu0 %v5404_v63  ;;  %v5480_v63 = vld [vmem:[%s6290_s13 + $0xa20] ss:$16 sps:$4 sm:$0xff]  }
  0xb8   : > { %3635 = vmatpush2.bf16.msra.mxu1 %v5407_v1  ;;  %3595 = vmatprep.subr.bf16.mxu0 %v5412_v2  ;;  %v5485_v1 = vld [vmem:[%s6290_s13 + $0x804] ss:$16 sps:$4 sm:$0xff]  }
  0xb9   : > { %3636 = vmatprep.subr.bf16.mxu1 %v5415_v3  ;;  %v5488_v2 = vld [vmem:[%s6290_s13 + $0xa04] ss:$16 sps:$4 sm:$0xff]   ;;  %v5483_v3 = vld [vmem:[%s6290_s13 + $0x800] ss:$16 sps:$4 sm:$0xff]  }
  0xbb   : > { %3596 = vmatpush2.bf16.msra.mxu0 %v5410_v4  ;;  %v5486_v4 = vld [vmem:[%s6290_s13 + $0xa00] ss:$16 sps:$4 sm:$0xff]  }
  0xbc   : > { %3637 = vmatpush2.bf16.msra.mxu1 %v5413_v5  ;;  %3597 = vmatprep.subr.bf16.mxu0 %v5418_v7  ;;  %v5491_v5 = vld [vmem:[%s6290_s13 + $0x9e4] ss:$16 sps:$4 sm:$0xff]  }
  0xbd   : > { %3638 = vmatprep.subr.bf16.mxu1 %v5421_v8  ;;  %v5494_v7 = vld [vmem:[%s6290_s13 + $0xbe4] ss:$16 sps:$4 sm:$0xff]   ;;  %v5489_v8 = vld [vmem:[%s6290_s13 + $0x9e0] ss:$16 sps:$4 sm:$0xff]  }
  0xbf   : > { %3598 = vmatpush2.bf16.msra.mxu0 %v5416_v9  ;;  %v5492_v9 = vld [vmem:[%s6290_s13 + $0xbe0] ss:$16 sps:$4 sm:$0xff]  }
  0xc0   : > { %3639 = vmatpush2.bf16.msra.mxu1 %v5419_v10  ;;  %3599 = vmatprep.subr.bf16.mxu0 %v5424_v11  ;;  %v5497_v10 = vld [vmem:[%s6290_s13 + $0x9c4] ss:$16 sps:$4 sm:$0xff]  }
  0xc1   : > { %3640 = vmatprep.subr.bf16.mxu1 %v5427_v12  ;;  %v5500_v11 = vld [vmem:[%s6290_s13 + $0xbc4] ss:$16 sps:$4 sm:$0xff]   ;;  %v5495_v12 = vld [vmem:[%s6290_s13 + $0x9c0] ss:$16 sps:$4 sm:$0xff]  }
  0xc3   : > { %3600 = vmatpush2.bf16.msra.mxu0 %v5422_v14  ;;  %v5498_v14 = vld [vmem:[%s6290_s13 + $0xbc0] ss:$16 sps:$4 sm:$0xff]  }
  0xc4   : > { %3641 = vmatpush2.bf16.msra.mxu1 %v5425_v15  ;;  %3601 = vmatprep.subr.bf16.mxu0 %v5430_v16  ;;  %v5503_v15 = vld [vmem:[%s6290_s13 + $0x9a4] ss:$16 sps:$4 sm:$0xff]  }
  0xc5   : > { %3642 = vmatprep.subr.bf16.mxu1 %v5433_v19  ;;  %v5506_v16 = vld [vmem:[%s6290_s13 + $0xba4] ss:$16 sps:$4 sm:$0xff]   ;;  %v5501_v19 = vld [vmem:[%s6290_s13 + $0x9a0] ss:$16 sps:$4 sm:$0xff]  }
  0xc7   : > { %3602 = vmatpush2.bf16.msra.mxu0 %v5428_v20  ;;  %v5504_v20 = vld [vmem:[%s6290_s13 + $0xba0] ss:$16 sps:$4 sm:$0xff]  }
  0xc8   : > { %3643 = vmatpush2.bf16.msra.mxu1 %v5431_v21  ;;  %3603 = vmatprep.subr.bf16.mxu0 %v5436_v22  ;;  %v5509_v21 = vld [vmem:[%s6290_s13 + $0x984] ss:$16 sps:$4 sm:$0xff]  }
  0xc9   : > { %3644 = vmatprep.subr.bf16.mxu1 %v5439_v24  ;;  %v5512_v22 = vld [vmem:[%s6290_s13 + $0xb84] ss:$16 sps:$4 sm:$0xff]   ;;  %v5507_v24 = vld [vmem:[%s6290_s13 + $0x980] ss:$16 sps:$4 sm:$0xff]  }
  0xcb   : > { %3604 = vmatpush2.bf16.msra.mxu0 %v5434_v25  ;;  %v5510_v25 = vld [vmem:[%s6290_s13 + $0xb80] ss:$16 sps:$4 sm:$0xff]  }
  0xcc   : > { %3645 = vmatpush2.bf16.msra.mxu1 %v5437_v27  ;;  %3655 = vmatprep.subr.bf16.mxu0 %v5443_v28  ;;  %v5515_v27 = vld [vmem:[%s6290_s13 + $0x964] ss:$16 sps:$4 sm:$0xff]  }
  0xcd   : > { %3696 = vmatprep.subr.bf16.mxu1 %v5446_v29  ;;  %v5518_v28 = vld [vmem:[%s6290_s13 + $0xb64] ss:$16 sps:$4 sm:$0xff]   ;;  %v5513_v29 = vld [vmem:[%s6290_s13 + $0x960] ss:$16 sps:$4 sm:$0xff]  }
  0xce   : > { %3606 = vmatmul.mubr.bf16.vlgmr.msra.gmra.mxu0 %v6472_v26 }
  0xcf   : > { %3647 = vmatmul.mubr.bf16.vlgmr.msra.gmra.mxu1 %v6479_v30  ;;  %3656 = vmatpush1.bf16.msra.mxu0 %v5441_v31  ;;  %v5516_v31 = vld [vmem:[%s6290_s13 + $0xb60] ss:$16 sps:$4 sm:$0xff]  }
  0xd0   : > { %3697 = vmatpush1.bf16.msra.mxu1 %v5444_v6  ;;  %3657 = vmatprep.subr.bf16.mxu0 %v5449_v33  ;;  %v5521_v6 = vld [vmem:[%s6290_s13 + $0x944] ss:$16 sps:$4 sm:$0xff]  }
  0xd1   : > { %3698 = vmatprep.subr.bf16.mxu1 %v5452_v34  ;;  %3687 = vmatprep.mubr.bf16.mxu0 %v6503_v41  ;;  %v5524_v33 = vld [vmem:[%s6290_s13 + $0xb44] ss:$16 sps:$4 sm:$0xff]   ;;  %v866_v34 = vcombine.high %v6486_v32, %v6486_v32  ;;  %v5528_v32 = vld [vmem:[%s6290_s13 + $0xb20] ss:$16 sps:$4 sm:$0xff]  }
  0xd2   : > { %3728 = vmatprep.mubr.bf16.mxu1 %v6508_v43 }
  0xd3   : > { %3658 = vmatpush1.bf16.msra.mxu0 %v5447_v37  ;;  %v5522_v37 = vld [vmem:[%s6290_s13 + $0xb40] ss:$16 sps:$4 sm:$0xff]  }
  0xd4   : > { %3699 = vmatpush1.bf16.msra.mxu1 %v5450_v38  ;;  %3659 = vmatprep.subr.bf16.mxu0 %v5455_v39  ;;  %v5527_v38 = vld [vmem:[%s6290_s13 + $0x924] ss:$16 sps:$4 sm:$0xff]  }
  0xd5   : > { %3700 = vmatprep.subr.bf16.mxu1 %v5458_v40  ;;  %v5530_v39 = vld [vmem:[%s6290_s13 + $0xb24] ss:$16 sps:$4 sm:$0xff]   ;;  %v6562_v40 = vrot.slane %v866_v34, %v6349_v49  ;;  %v5588_v34 = vld [vmem:[%s6290_s13 + $0xfe0] ss:$16 sps:$4 sm:$0xff]  }
  0xd7   : > { %3660 = vmatpush1.bf16.msra.mxu0 %v5453_v44  ;;  %v5525_v44 = vld [vmem:[%s6290_s13 + $0x920] ss:$16 sps:$4 sm:$0xff]  }
  0xd8   : > { %3701 = vmatpush1.bf16.msra.mxu1 %v5456_v45  ;;  %3661 = vmatprep.subr.bf16.mxu0 %v5461_v46  ;;  %v5533_v45 = vld [vmem:[%s6290_s13 + $0x904] ss:$16 sps:$4 sm:$0xff]  }
  0xd9   : > { %3702 = vmatprep.subr.bf16.mxu1 %v5464_v47  ;;  %v5536_v46 = vld [vmem:[%s6290_s13 + $0xb04] ss:$16 sps:$4 sm:$0xff]   ;;  %v882_v47 = vcombine.high %v6562_v40, %v6562_v40 }
  0xdb   : > { %3662 = vmatpush1.bf16.msra.mxu0 %v5459_v48  ;;  %v5531_v48 = vld [vmem:[%s6290_s13 + $0x900] ss:$16 sps:$4 sm:$0xff]  }
  0xdc   : > { %3703 = vmatpush1.bf16.msra.mxu1 %v5462_v50  ;;  %3663 = vmatprep.subr.bf16.mxu0 %v5467_v51  ;;  %v6573_v50 = vrot.slane %v6492_v35, %v6349_v49  ;;  %v5534_v51 = vld [vmem:[%s6290_s13 + $0xb00] ss:$16 sps:$4 sm:$0xff]  }
  0xdd   : > { %3704 = vmatprep.subr.bf16.mxu1 %v5470_v52  ;;  %v5539_v52 = vld [vmem:[%s6290_s13 + $0xce4] ss:$16 sps:$4 sm:$0xff]   ;;  %v5537_v35 = vld [vmem:[%s6290_s13 + $0xce0] ss:$16 sps:$4 sm:$0xff]  }
  0xdf   : > { %3664 = vmatpush1.bf16.msra.mxu0 %v5465_v53  ;;  %v5542_v53 = vld [vmem:[%s6290_s13 + $0xee4] ss:$16 sps:$4 sm:$0xff]  }
  0xe0   : > { %3705 = vmatpush1.bf16.msra.mxu1 %v5468_v54  ;;  %3665 = vmatprep.subr.bf16.mxu0 %v5473_v55  ;;  %v6579_v54 = vrot.slane %v882_v47, %v6349_v49  ;;  %v6583_v55 = vcombine.high %v6573_v50, %v6573_v50  ;;  %v5605_v47 = vld [vmem:[%s6290_s13 + $0xd84] ss:$16 sps:$4 sm:$0xff]  }
  0xe1   : > { %3706 = vmatprep.subr.bf16.mxu1 %v5476_v56  ;;  %v5540_v56 = vld [vmem:[%s6290_s13 + $0xee0] ss:$16 sps:$4 sm:$0xff]  }
  0xe3   : > { %3666 = vmatpush1.bf16.msra.mxu0 %v5471_v57  ;;  %v5545_v57 = vld [vmem:[%s6290_s13 + $0xcc4] ss:$16 sps:$4 sm:$0xff]  }
  0xe4   : > { %3707 = vmatpush1.bf16.msra.mxu1 %v5474_v58  ;;  %3667 = vmatprep.subr.bf16.mxu0 %v5479_v59  ;;  %v5548_v58 = vld [vmem:[%s6290_s13 + $0xec4] ss:$16 sps:$4 sm:$0xff]   ;;  %v6591_v59 = vcombine.high %v6579_v54, %v6579_v54 }
  0xe5   : > { %3708 = vmatprep.subr.bf16.mxu1 %v5482_v61  ;;  %v5543_v61 = vld [vmem:[%s6290_s13 + $0xcc0] ss:$16 sps:$4 sm:$0xff]  }
  0xe7   : > { %3668 = vmatpush1.bf16.msra.mxu0 %v5477_v62  ;;  %v5546_v62 = vld [vmem:[%s6290_s13 + $0xec0] ss:$16 sps:$4 sm:$0xff]  }
  0xe8   : > { %3709 = vmatpush1.bf16.msra.mxu1 %v5480_v63  ;;  %3669 = vmatprep.subr.bf16.mxu0 %v5485_v1  ;;  %v5551_v63 = vld [vmem:[%s6290_s13 + $0xca4] ss:$16 sps:$4 sm:$0xff]  }
  0xe9   : > { %3710 = vmatprep.subr.bf16.mxu1 %v5488_v2  ;;  %v5554_v1 = vld [vmem:[%s6290_s13 + $0xea4] ss:$16 sps:$4 sm:$0xff]   ;;  %v5549_v2 = vld [vmem:[%s6290_s13 + $0xca0] ss:$16 sps:$4 sm:$0xff]  }
  0xeb   : > { %3670 = vmatpush1.bf16.msra.mxu0 %v5483_v3  ;;  %v5552_v3 = vld [vmem:[%s6290_s13 + $0xea0] ss:$16 sps:$4 sm:$0xff]  }
  0xec   : > { %3711 = vmatpush1.bf16.msra.mxu1 %v5486_v4  ;;  %3671 = vmatprep.subr.bf16.mxu0 %v5491_v5  ;;  %v5557_v4 = vld [vmem:[%s6290_s13 + $0xc84] ss:$16 sps:$4 sm:$0xff]  }
  0xed   : > { %3712 = vmatprep.subr.bf16.mxu1 %v5494_v7  ;;  %v5560_v5 = vld [vmem:[%s6290_s13 + $0xe84] ss:$16 sps:$4 sm:$0xff]   ;;  %v5555_v7 = vld [vmem:[%s6290_s13 + $0xc80] ss:$16 sps:$4 sm:$0xff]  }
  0xef   : > { %3672 = vmatpush2.bf16.msra.mxu0 %v5489_v8  ;;  %v5558_v8 = vld [vmem:[%s6290_s13 + $0xe80] ss:$16 sps:$4 sm:$0xff]  }
  0xf0   : > { %3713 = vmatpush2.bf16.msra.mxu1 %v5492_v9  ;;  %3673 = vmatprep.subr.bf16.mxu0 %v5497_v10  ;;  %v5563_v9 = vld [vmem:[%s6290_s13 + $0xc64] ss:$16 sps:$4 sm:$0xff]  }
  0xf1   : > { %3714 = vmatprep.subr.bf16.mxu1 %v5500_v11  ;;  %v5566_v10 = vld [vmem:[%s6290_s13 + $0xe64] ss:$16 sps:$4 sm:$0xff]   ;;  %v5561_v11 = vld [vmem:[%s6290_s13 + $0xc60] ss:$16 sps:$4 sm:$0xff]  }
  0xf3   : > { %3674 = vmatpush2.bf16.msra.mxu0 %v5495_v12  ;;  %v5564_v12 = vld [vmem:[%s6290_s13 + $0xe60] ss:$16 sps:$4 sm:$0xff]  }
  0xf4   : > { %3715 = vmatpush2.bf16.msra.mxu1 %v5498_v14  ;;  %3675 = vmatprep.subr.bf16.mxu0 %v5503_v15  ;;  %v5569_v14 = vld [vmem:[%s6290_s13 + $0xc44] ss:$16 sps:$4 sm:$0xff]  }
  0xf5   : > { %3716 = vmatprep.subr.bf16.mxu1 %v5506_v16  ;;  %v5572_v15 = vld [vmem:[%s6290_s13 + $0xe44] ss:$16 sps:$4 sm:$0xff]   ;;  %v5567_v16 = vld [vmem:[%s6290_s13 + $0xc40] ss:$16 sps:$4 sm:$0xff]  }
  0xf7   : > { %3676 = vmatpush2.bf16.msra.mxu0 %v5501_v19  ;;  %v5570_v19 = vld [vmem:[%s6290_s13 + $0xe40] ss:$16 sps:$4 sm:$0xff]  }
  0xf8   : > { %3717 = vmatpush2.bf16.msra.mxu1 %v5504_v20  ;;  %3677 = vmatprep.subr.bf16.mxu0 %v5509_v21  ;;  %v5575_v20 = vld [vmem:[%s6290_s13 + $0xc24] ss:$16 sps:$4 sm:$0xff]  }
  0xf9   : > { %3718 = vmatprep.subr.bf16.mxu1 %v5512_v22  ;;  %v5578_v21 = vld [vmem:[%s6290_s13 + $0xe24] ss:$16 sps:$4 sm:$0xff]   ;;  %v5573_v22 = vld [vmem:[%s6290_s13 + $0xc20] ss:$16 sps:$4 sm:$0xff]  }
  0xfb   : > { %3678 = vmatpush2.bf16.msra.mxu0 %v5507_v24  ;;  %v5576_v24 = vld [vmem:[%s6290_s13 + $0xe20] ss:$16 sps:$4 sm:$0xff]  }
  0xfc   : > { %3719 = vmatpush2.bf16.msra.mxu1 %v5510_v25  ;;  %3679 = vmatprep.subr.bf16.mxu0 %v5515_v27  ;;  %v5581_v25 = vld [vmem:[%s6290_s13 + $0xc04] ss:$16 sps:$4 sm:$0xff]  }
  0xfd   : > { %3720 = vmatprep.subr.bf16.mxu1 %v5518_v28  ;;  %v5584_v27 = vld [vmem:[%s6290_s13 + $0xe04] ss:$16 sps:$4 sm:$0xff]   ;;  %v5579_v28 = vld [vmem:[%s6290_s13 + $0xc00] ss:$16 sps:$4 sm:$0xff]  }
  0xff   : > { %3680 = vmatpush2.bf16.msra.mxu0 %v5513_v29  ;;  %v5582_v29 = vld [vmem:[%s6290_s13 + $0xe00] ss:$16 sps:$4 sm:$0xff]  }
 0x100   : > { %3721 = vmatpush2.bf16.msra.mxu1 %v5516_v31  ;;  %3681 = vmatprep.subr.bf16.mxu0 %v5521_v6  ;;  %v5587_v31 = vld [vmem:[%s6290_s13 + $0xde4] ss:$16 sps:$4 sm:$0xff]  }
 0x101   : > { %3722 = vmatprep.subr.bf16.mxu1 %v5524_v33  ;;  %v5590_v6 = vld [vmem:[%s6290_s13 + $0xfe4] ss:$16 sps:$4 sm:$0xff]   ;;  %v5585_v33 = vld [vmem:[%s6290_s13 + $0xde0] ss:$16 sps:$4 sm:$0xff]  }
 0x103   : > { %3682 = vmatpush2.bf16.msra.mxu0 %v5519_v36  ;;  %v5593_v36 = vld [vmem:[%s6290_s13 + $0xdc4] ss:$16 sps:$4 sm:$0xff]  }
 0x104   : > { %3723 = vmatpush2.bf16.msra.mxu1 %v5522_v37  ;;  %3683 = vmatprep.subr.bf16.mxu0 %v5527_v38  ;;  %v5596_v37 = vld [vmem:[%s6290_s13 + $0xfc4] ss:$16 sps:$4 sm:$0xff]   ;;  %v5591_v38 = vld [vmem:[%s6290_s13 + $0xdc0] ss:$16 sps:$4 sm:$0xff]  }
 0x105   : > { %3724 = vmatprep.subr.bf16.mxu1 %v5530_v39  ;;  %v5594_v39 = vld [vmem:[%s6290_s13 + $0xfc0] ss:$16 sps:$4 sm:$0xff]  }
 0x107   : > { %3684 = vmatpush2.bf16.msra.mxu0 %v5525_v44  ;;  %v5599_v44 = vld [vmem:[%s6290_s13 + $0xda4] ss:$16 sps:$4 sm:$0xff]  }
 0x108   : > { %3725 = vmatpush2.bf16.msra.mxu1 %v5528_v32  ;;  %3685 = vmatprep.subr.bf16.mxu0 %v5533_v45  ;;  %v5602_v32 = vld [vmem:[%s6290_s13 + $0xfa4] ss:$16 sps:$4 sm:$0xff]   ;;  %v5597_v45 = vld [vmem:[%s6290_s13 + $0xda0] ss:$16 sps:$4 sm:$0xff]  }
 0x109   : > { %3726 = vmatprep.subr.bf16.mxu1 %v5536_v46  ;;  %v5600_v46 = vld [vmem:[%s6290_s13 + $0xfa0] ss:$16 sps:$4 sm:$0xff]  }
 0x10b   : > { %3686 = vmatpush2.bf16.msra.mxu0 %v5531_v48  ;;  %v5608_v48 = vld [vmem:[%s6290_s13 + $0xf84] ss:$16 sps:$4 sm:$0xff]  }
 0x10c   : > { %3727 = vmatpush2.bf16.msra.mxu1 %v5534_v51  ;;  %3737 = vmatprep.subr.bf16.mxu0 %v5539_v52  ;;  %v5603_v51 = vld [vmem:[%s6290_s13 + $0xd80] ss:$16 sps:$4 sm:$0xff]  }
 0x10d   : > { %3778 = vmatprep.subr.bf16.mxu1 %v5542_v53  ;;  %v5606_v52 = vld [vmem:[%s6290_s13 + $0xf80] ss:$16 sps:$4 sm:$0xff]   ;;  %v5611_v53 = vld [vmem:[%s6290_s13 + $0xd64] ss:$16 sps:$4 sm:$0xff]  }
 0x10e   : > { %3688 = vmatmul.mubr.bf16.vlgmr.msra.gmra.mxu0 %v6573_v50 }
 0x10f   : > { %3729 = vmatmul.mubr.bf16.vlgmr.msra.gmra.mxu1 %v6583_v55  ;;  %3738 = vmatpush1.bf16.msra.mxu0 %v5537_v35  ;;  %v5614_v35 = vld [vmem:[%s6290_s13 + $0xf64] ss:$16 sps:$4 sm:$0xff]  }
 0x110   : > { %3779 = vmatpush1.bf16.msra.mxu1 %v5540_v56  ;;  %3739 = vmatprep.subr.bf16.mxu0 %v5545_v57  ;;  %v5609_v56 = vld [vmem:[%s6290_s13 + $0xd60] ss:$16 sps:$4 sm:$0xff]  }
 0x111   : > { %3780 = vmatprep.subr.bf16.mxu1 %v5548_v58  ;;  %3769 = vmatprep.mubr.bf16.mxu0 %v6579_v54  ;;  %v5612_v57 = vld [vmem:[%s6290_s13 + $0xf60] ss:$16 sps:$4 sm:$0xff]   ;;  %v5617_v58 = vld [vmem:[%s6290_s13 + $0xd44] ss:$16 sps:$4 sm:$0xff]  }
 0x112   : > { %3810 = vmatprep.mubr.bf16.mxu1 %v6591_v59 }
 0x113   : > { %3740 = vmatpush1.bf16.msra.mxu0 %v5543_v61  ;;  %v5620_v61 = vld [vmem:[%s6290_s13 + $0xf44] ss:$16 sps:$4 sm:$0xff]  }
 0x114   : > { %3781 = vmatpush1.bf16.msra.mxu1 %v5546_v62  ;;  %3741 = vmatprep.subr.bf16.mxu0 %v5551_v63  ;;  %v5615_v62 = vld [vmem:[%s6290_s13 + $0xd40] ss:$16 sps:$4 sm:$0xff]  }
 0x115   : > { %3782 = vmatprep.subr.bf16.mxu1 %v5554_v1  ;;  %v5618_v63 = vld [vmem:[%s6290_s13 + $0xf40] ss:$16 sps:$4 sm:$0xff]   ;;  %v5623_v1 = vld [vmem:[%s6290_s13 + $0xd24] ss:$16 sps:$4 sm:$0xff]  }
 0x117   : > { %3742 = vmatpush1.bf16.msra.mxu0 %v5549_v2  ;;  %v5626_v2 = vld [vmem:[%s6290_s13 + $0xf24] ss:$16 sps:$4 sm:$0xff]  }
 0x118   : > { %3783 = vmatpush1.bf16.msra.mxu1 %v5552_v3  ;;  %3743 = vmatprep.subr.bf16.mxu0 %v5557_v4  ;;  %v5621_v3 = vld [vmem:[%s6290_s13 + $0xd20] ss:$16 sps:$4 sm:$0xff]  }
 0x119   : > { %3784 = vmatprep.subr.bf16.mxu1 %v5560_v5  ;;  %v5624_v4 = vld [vmem:[%s6290_s13 + $0xf20] ss:$16 sps:$4 sm:$0xff]   ;;  %v5629_v5 = vld [vmem:[%s6290_s13 + $0xd04] ss:$16 sps:$4 sm:$0xff]  }
 0x11b   : > { %3744 = vmatpush1.bf16.msra.mxu0 %v5555_v7  ;;  %v5632_v7 = vld [vmem:[%s6290_s13 + $0xf04] ss:$16 sps:$4 sm:$0xff]  }
 0x11c   : > { %3785 = vmatpush1.bf16.msra.mxu1 %v5558_v8  ;;  %3745 = vmatprep.subr.bf16.mxu0 %v5563_v9  ;;  %v5627_v8 = vld [vmem:[%s6290_s13 + $0xd00] ss:$16 sps:$4 sm:$0xff]  }
 0x11d   : > { %3786 = vmatprep.subr.bf16.mxu1 %v5566_v10  ;;  %v5630_v9 = vld [vmem:[%s6290_s13 + $0xf00] ss:$16 sps:$4 sm:$0xff]   ;;  %v6657_v10 = vrot.slane %v6562_v40, %v6349_v49  ;;  %v5634_v49 = vld [vmem:[%s6290_s13 + $0xe8] ss:$16 sps:$4 sm:$0xff]  }
 0x11f   : > { %3746 = vmatpush1.bf16.msra.mxu0 %v5561_v11  ;;  %v793_v11 = vld [vmem:[%s6296_s7] sm:$0xf] }
 0x120   : > { %3787 = vmatpush1.bf16.msra.mxu1 %v5564_v12  ;;  %3747 = vmatprep.subr.bf16.mxu0 %v5569_v14  ;;  %v797_v12 = vsub.s32 0, %v6341_v42  ;;  %v5636_v14 = vld [vmem:[%s6290_s13 + $0xec] ss:$16 sps:$4 sm:$0xff]  }
 0x121   : > { %3788 = vmatprep.subr.bf16.mxu1 %v5572_v15  ;;  %v5639_v15 = vld [vmem:[%s6290_s13 + $0x2ec] ss:$16 sps:$4 sm:$0xff]  }
 0x122   : > { %v798_v40 = vrot.slane %v793_v11, %v797_v12  ;;  %v5687_v12 = vld [vmem:[%s6290_s13 + $0x3ec] ss:$16 sps:$4 sm:$0xff]  }
 0x123   : > { %3748 = vmatpush1.bf16.msra.mxu0 %v5567_v16  ;;  %v801_v16 = vsub.s32 1, %v6341_v42 }
 0x124   : > { %3789 = vmatpush1.bf16.msra.mxu1 %v5570_v19  ;;  %3749 = vmatprep.subr.bf16.mxu0 %v5575_v20  ;;  %v6666_v19 = vcombine.high %v6657_v10, %v6657_v10  ;;  %v5637_v20 = vld [vmem:[%s6290_s13 + $0x2e8] ss:$16 sps:$4 sm:$0xff]  }
 0x125   : > { %3790 = vmatprep.subr.bf16.mxu1 %v5578_v21  ;;  %v5642_v21 = vld [vmem:[%s6290_s13 + $0xcc] ss:$16 sps:$4 sm:$0xff]  }
 0x127   : > { %3750 = vmatpush1.bf16.msra.mxu0 %v5573_v22  ;;  %v5645_v22 = vld [vmem:[%s6290_s13 + $0x2cc] ss:$16 sps:$4 sm:$0xff]  }
 0x128   : > { %3791 = vmatpush1.bf16.msra.mxu1 %v5576_v24  ;;  %3751 = vmatprep.subr.bf16.mxu0 %v5581_v25  ;;  %v802_v24 = vrot.slane %v793_v11, %v801_v16  ;;  %v5684_v11 = vld [vmem:[%s6290_s13 + $0x1ec] ss:$16 sps:$4 sm:$0xff]  }
 0x129   : > { %3792 = vmatprep.subr.bf16.mxu1 %v5584_v27  ;;  %v5690_v16 = vld [vmem:[%s6290_s13 + $0x1cc] ss:$16 sps:$4 sm:$0xff]  }
 0x12b   : > { %3752 = vmatpush1.bf16.msra.mxu0 %v5579_v28  ;;  %v5640_v28 = vld [vmem:[%s6290_s13 + $0xc8] ss:$16 sps:$4 sm:$0xff]  }
 0x12c   : > { %3793 = vmatpush1.bf16.msra.mxu1 %v5582_v29  ;;  %3753 = vmatprep.subr.bf16.mxu0 %v5587_v31  ;;  %v5643_v29 = vld [vmem:[%s6290_s13 + $0x2c8] ss:$16 sps:$4 sm:$0xff]  }
 0x12d   : > { %3794 = vmatprep.subr.bf16.mxu1 %v5590_v6 }
 0x12f   : > { %3754 = vmatpush2.bf16.msra.mxu0 %v5585_v33 }
 0x130   : > { %3795 = vmatpush2.bf16.msra.mxu1 %v5588_v34  ;;  %3755 = vmatprep.subr.bf16.mxu0 %v5593_v36  ;;  %v5648_v34 = vld [vmem:[%s6290_s13 + $0xac] ss:$16 sps:$4 sm:$0xff]  }
 0x131   : > { %3796 = vmatprep.subr.bf16.mxu1 %v5596_v37  ;;  %v5651_v36 = vld [vmem:[%s6290_s13 + $0x2ac] ss:$16 sps:$4 sm:$0xff]  }
 0x133   : > { %3756 = vmatpush2.bf16.msra.mxu0 %v5591_v38 }
 0x134   : > { %3797 = vmatpush2.bf16.msra.mxu1 %v5594_v39  ;;  %3757 = vmatprep.subr.bf16.mxu0 %v5599_v44  ;;  %v5646_v39 = vld [vmem:[%s6290_s13 + $0xa8] ss:$16 sps:$4 sm:$0xff]  }
 0x135   : > { %3798 = vmatprep.subr.bf16.mxu1 %v5602_v32  ;;  %v5649_v44 = vld [vmem:[%s6290_s13 + $0x2a8] ss:$16 sps:$4 sm:$0xff]  }
 0x137   : > { %3758 = vmatpush2.bf16.msra.mxu0 %v5597_v45 }
 0x138   : > { %3799 = vmatpush2.bf16.msra.mxu1 %v5600_v46  ;;  %3759 = vmatprep.subr.bf16.mxu0 %v5605_v47 }
 0x139   : > { %3800 = vmatprep.subr.bf16.mxu1 %v5608_v48 }
 0x13b   : > { %3760 = vmatpush2.bf16.msra.mxu0 %v5603_v51  ;;  %v5654_v51 = vld [vmem:[%s6290_s13 + $0x8c] ss:$16 sps:$4 sm:$0xff]  }
 0x13c   : > { %3801 = vmatpush2.bf16.msra.mxu1 %v5606_v52  ;;  %3761 = vmatprep.subr.bf16.mxu0 %v5611_v53  ;;  %v5655_v52 = vld [vmem:[%s6290_s13 + $0x288] ss:$16 sps:$4 sm:$0xff]   ;;  %v5660_v53 = vld [vmem:[%s6290_s13 + $0x6c] ss:$16 sps:$4 sm:$0xff]  }
 0x13d   : > { %3802 = vmatprep.subr.bf16.mxu1 %v5614_v35  ;;  %v5663_v35 = vld [vmem:[%s6290_s13 + $0x26c] ss:$16 sps:$4 sm:$0xff]  }
 0x13f   : > { %3762 = vmatpush2.bf16.msra.mxu0 %v5609_v56  ;;  %v5658_v56 = vld [vmem:[%s6290_s13 + $0x68] ss:$16 sps:$4 sm:$0xff]  }
 0x140   : > { %3803 = vmatpush2.bf16.msra.mxu1 %v5612_v57  ;;  %3763 = vmatprep.subr.bf16.mxu0 %v5617_v58  ;;  %v5661_v57 = vld [vmem:[%s6290_s13 + $0x268] ss:$16 sps:$4 sm:$0xff]   ;;  %v5666_v58 = vld [vmem:[%s6290_s13 + $0x4c] ss:$16 sps:$4 sm:$0xff]  }
 0x141   : > { %3804 = vmatprep.subr.bf16.mxu1 %v5620_v61  ;;  %v5669_v61 = vld [vmem:[%s6290_s13 + $0x24c] ss:$16 sps:$4 sm:$0xff]  }
 0x143   : > { %3764 = vmatpush2.bf16.msra.mxu0 %v5615_v62  ;;  %v5664_v62 = vld [vmem:[%s6290_s13 + $0x48] ss:$16 sps:$4 sm:$0xff]  }
 0x144   : > { %3805 = vmatpush2.bf16.msra.mxu1 %v5618_v63  ;;  %3765 = vmatprep.subr.bf16.mxu0 %v5623_v1  ;;  %v5667_v63 = vld [vmem:[%s6290_s13 + $0x248] ss:$16 sps:$4 sm:$0xff]   ;;  %v5672_v1 = vld [vmem:[%s6290_s13 + $0x2c] ss:$16 sps:$4 sm:$0xff]  }
 0x145   : > { %3806 = vmatprep.subr.bf16.mxu1 %v5626_v2  ;;  %v5675_v2 = vld [vmem:[%s6290_s13 + $0x22c] ss:$16 sps:$4 sm:$0xff]  }
 0x147   : > { %3766 = vmatpush2.bf16.msra.mxu0 %v5621_v3  ;;  %v5670_v3 = vld [vmem:[%s6290_s13 + $0x28] ss:$16 sps:$4 sm:$0xff]  }
 0x148   : > { %3807 = vmatpush2.bf16.msra.mxu1 %v5624_v4  ;;  %3767 = vmatprep.subr.bf16.mxu0 %v5629_v5  ;;  %v5673_v4 = vld [vmem:[%s6290_s13 + $0x228] ss:$16 sps:$4 sm:$0xff]   ;;  %v5678_v5 = vld [vmem:[%s6290_s13 + $0xc] ss:$16 sps:$4 sm:$0xff]  }
 0x149   : > { %3808 = vmatprep.subr.bf16.mxu1 %v5632_v7  ;;  %v5681_v7 = vld [vmem:[%s6290_s13 + $0x20c] ss:$16 sps:$4 sm:$0xff]  }
 0x14b   : > { %3768 = vmatpush2.bf16.msra.mxu0 %v5627_v8  ;;  %v5676_v8 = vld [vmem:[%s6290_s13 + $0x8] ss:$16 sps:$4 sm:$0xff]  }
 0x14c   : > { %3809 = vmatpush2.bf16.msra.mxu1 %v5630_v9  ;;  %3819 = vmatprep.subr.bf16.mxu0 %v5636_v14  ;;  %v5679_v9 = vld [vmem:[%s6290_s13 + $0x208] ss:$16 sps:$4 sm:$0xff]  }
 0x14d   : > { %3860 = vmatprep.subr.bf16.mxu1 %v5639_v15  ;;  %v5682_v14 = vld [vmem:[%s6290_s13 + $0x1e8] ss:$16 sps:$4 sm:$0xff]  }
 0x14e   : > { %v3525_v25 = vpop.f32.mrf.mxu0  ;;  %3770 = vmatmul.mubr.bf16.vlgmr.msra.gmra.mxu0 %v6657_v10  ;;  %v5685_v15 = vld [vmem:[%s6290_s13 + $0x3e8] ss:$16 sps:$4 sm:$0xff]  }
 0x14f   : > { %v3566_v27 = vpop.f32.mrf.mxu1  ;;  %3811 = vmatmul.mubr.bf16.vlgmr.msra.gmra.mxu1 %v6666_v19  ;;  %v3526_v31 = vadd.f32 %v3525_v25, %v798_v40  ;;  %3820 = vmatpush1.bf16.msra.mxu0 %v5634_v49  ;;  %v5693_v49 = vld [vmem:[%s6290_s13 + $0x3cc] ss:$16 sps:$4 sm:$0xff]   ;;  %v5688_v40 = vld [vmem:[%s6290_s13 + $0x1c8] ss:$16 sps:$4 sm:$0xff]  }
 0x150   : > { %3861 = vmatpush1.bf16.msra.mxu1 %v5637_v20  ;;  %v3527_v6 = vpop.f32.mrf.mxu0  ;;  %3821 = vmatprep.subr.bf16.mxu0 %v5642_v21  ;;  %v5691_v20 = vld [vmem:[%s6290_s13 + $0x3c8] ss:$16 sps:$4 sm:$0xff]   ;;  %v5696_v21 = vld [vmem:[%s6290_s13 + $0x1ac] ss:$16 sps:$4 sm:$0xff]  }
 0x151   : > { %v3568_v33 = vpop.f32.mrf.mxu1  ;;  %3862 = vmatprep.subr.bf16.mxu1 %v5645_v22  ;;  %v6678_v37 = vadd.f32 %v3566_v27, %v3526_v31  ;;  %v3528_v38 = vadd.f32 %v3527_v6, %v802_v24  ;;  %3851 = vmatprep.mubr.bf16.mxu0 %v6363_v60  ;;  %v5657_v60 = vld [vmem:[%s6290_s13 + $0x28c] ss:$16 sps:$4 sm:$0xff]   ;;  %v5694_v24 = vld [vmem:[%s6290_s13 + $0x1a8] ss:$16 sps:$4 sm:$0xff]  }
 0x152   : > { %3892 = vmatprep.mubr.bf16.mxu1 %v6370_v0  ;;  %v3529_v32 = vpop.f32.mrf.mxu0  ;;  %v5652_v0 = vld [vmem:[%s6290_s13 + $0x88] ss:$16 sps:$4 sm:$0xff]   ;;  %v5699_v22 = vld [vmem:[%s6290_s13 + $0x3ac] ss:$16 sps:$4 sm:$0xff]  }
 0x153   : > { %v3570_v45 = vpop.f32.mrf.mxu1  ;;  %v6684_v46 = vadd.f32 %v3568_v33, %v3528_v38  ;;  %3822 = vmatpush1.bf16.msra.mxu0 %v5640_v28  ;;  %v5697_v25 = vld [vmem:[%s6290_s13 + $0x3a8] ss:$16 sps:$4 sm:$0xff]   ;;  %v5702_v27 = vld [vmem:[%s6290_s13 + $0x18c] ss:$16 sps:$4 sm:$0xff]  }
 0x154   : > { %3863 = vmatpush1.bf16.msra.mxu1 %v5643_v29  ;;  %v3530_v47 = vpop.f32.mrf.mxu0  ;;  %3823 = vmatprep.subr.bf16.mxu0 %v5648_v34  ;;  %v5705_v28 = vld [vmem:[%s6290_s13 + $0x38c] ss:$16 sps:$4 sm:$0xff]   ;;  %v5700_v29 = vld [vmem:[%s6290_s13 + $0x188] ss:$16 sps:$4 sm:$0xff]  }
 0x155   : > { %v3571_v48 = vpop.f32.mrf.mxu1  ;;  %3864 = vmatprep.subr.bf16.mxu1 %v5651_v36  ;;  %v5703_v31 = vld [vmem:[%s6290_s13 + $0x388] ss:$16 sps:$4 sm:$0xff]   ;;  %v5708_v6 = vld [vmem:[%s6290_s13 + $0x16c] ss:$16 sps:$4 sm:$0xff]  }
 0x156   : > { %v5711_v33 = vld [vmem:[%s6290_s13 + $0x36c] ss:$16 sps:$4 sm:$0xff]   ;;  %v5706_v34 = vld [vmem:[%s6290_s13 + $0x168] ss:$16 sps:$4 sm:$0xff]  }
 0x157   : > { %3824 = vmatpush1.bf16.msra.mxu0 %v5646_v39  ;;  %v5709_v36 = vld [vmem:[%s6290_s13 + $0x368] ss:$16 sps:$4 sm:$0xff]   ;;  %v5714_v38 = vld [vmem:[%s6290_s13 + $0x14c] ss:$16 sps:$4 sm:$0xff]  }
 0x158   : > { %3865 = vmatpush1.bf16.msra.mxu1 %v5649_v44  ;;  %3825 = vmatprep.subr.bf16.mxu0 %v5654_v51  ;;  %v5717_v39 = vld [vmem:[%s6290_s13 + $0x34c] ss:$16 sps:$4 sm:$0xff]   ;;  %v5712_v44 = vld [vmem:[%s6290_s13 + $0x148] ss:$16 sps:$4 sm:$0xff]  }
 0x159   : > { %3866 = vmatprep.subr.bf16.mxu1 %v5657_v60  ;;  %v5715_v32 = vld [vmem:[%s6290_s13 + $0x348] ss:$16 sps:$4 sm:$0xff]   ;;  %v5720_v45 = vld [vmem:[%s6290_s13 + $0x12c] ss:$16 sps:$4 sm:$0xff]  }
 0x15a   : > { %v5723_v47 = vld [vmem:[%s6290_s13 + $0x32c] ss:$16 sps:$4 sm:$0xff]   ;;  %v5718_v48 = vld [vmem:[%s6290_s13 + $0x128] ss:$16 sps:$4 sm:$0xff]  }
 0x15b   : > { %3826 = vmatpush1.bf16.msra.mxu0 %v5652_v0  ;;  %v5721_v51 = vld [vmem:[%s6290_s13 + $0x328] ss:$16 sps:$4 sm:$0xff]   ;;  %v5726_v60 = vld [vmem:[%s6290_s13 + $0x10c] ss:$16 sps:$4 sm:$0xff]  }
 0x15c   : > { %3867 = vmatpush1.bf16.msra.mxu1 %v5655_v52  ;;  %3827 = vmatprep.subr.bf16.mxu0 %v5660_v53  ;;  %v5729_v0 = vld [vmem:[%s6290_s13 + $0x30c] ss:$16 sps:$4 sm:$0xff]   ;;  %v5724_v52 = vld [vmem:[%s6290_s13 + $0x108] ss:$16 sps:$4 sm:$0xff]  }
 0x15d   : > { %3868 = vmatprep.subr.bf16.mxu1 %v5663_v35  ;;  %v5727_v53 = vld [vmem:[%s6290_s13 + $0x308] ss:$16 sps:$4 sm:$0xff]   ;;  %v5732_v35 = vld [vmem:[%s6290_s13 + $0x4ec] ss:$16 sps:$4 sm:$0xff]  }
 0x15f   : > { %3828 = vmatpush1.bf16.msra.mxu0 %v5658_v56  ;;  %v5735_v56 = vld [vmem:[%s6290_s13 + $0x6ec] ss:$16 sps:$4 sm:$0xff]  }
 0x160   : > { %3869 = vmatpush1.bf16.msra.mxu1 %v5661_v57  ;;  %3829 = vmatprep.subr.bf16.mxu0 %v5666_v58  ;;  %v5730_v57 = vld [vmem:[%s6290_s13 + $0x4e8] ss:$16 sps:$4 sm:$0xff]  }
 0x161   : > { %3870 = vmatprep.subr.bf16.mxu1 %v5669_v61  ;;  %v5733_v58 = vld [vmem:[%s6290_s13 + $0x6e8] ss:$16 sps:$4 sm:$0xff]   ;;  %v5738_v61 = vld [vmem:[%s6290_s13 + $0x4cc] ss:$16 sps:$4 sm:$0xff]  }
 0x163   : > { %3830 = vmatpush1.bf16.msra.mxu0 %v5664_v62  ;;  %v5741_v62 = vld [vmem:[%s6290_s13 + $0x6cc] ss:$16 sps:$4 sm:$0xff]  }
 0x164   : > { %3871 = vmatpush1.bf16.msra.mxu1 %v5667_v63  ;;  %3831 = vmatprep.subr.bf16.mxu0 %v5672_v1 }
 0x165   : > { %3872 = vmatprep.subr.bf16.mxu1 %v5675_v2 }
 0x167   : > { %3832 = vmatpush1.bf16.msra.mxu0 %v5670_v3  ;;  %v5736_v3 = vld [vmem:[%s6290_s13 + $0x4c8] ss:$16 sps:$4 sm:$0xff]  }
 0x168   : > { %3873 = vmatpush1.bf16.msra.mxu1 %v5673_v4  ;;  %3833 = vmatprep.subr.bf16.mxu0 %v5678_v5  ;;  %v5739_v4 = vld [vmem:[%s6290_s13 + $0x6c8] ss:$16 sps:$4 sm:$0xff]  }
 0x169   : > { %3874 = vmatprep.subr.bf16.mxu1 %v5681_v7 }
 0x16b   : > { %3834 = vmatpush1.bf16.msra.mxu0 %v5676_v8  ;;  %v5744_v8 = vld [vmem:[%s6290_s13 + $0x4ac] ss:$16 sps:$4 sm:$0xff]  }
 0x16c   : > { %3875 = vmatpush1.bf16.msra.mxu1 %v5679_v9  ;;  %3835 = vmatprep.subr.bf16.mxu0 %v5684_v11  ;;  %v5747_v9 = vld [vmem:[%s6290_s13 + $0x6ac] ss:$16 sps:$4 sm:$0xff]  }
 0x16d   : > { %3876 = vmatprep.subr.bf16.mxu1 %v5687_v12 }
 0x16f   : > { %3836 = vmatpush2.bf16.msra.mxu0 %v5682_v14  ;;  %v5742_v14 = vld [vmem:[%s6290_s13 + $0x4a8] ss:$16 sps:$4 sm:$0xff]  }
 0x170   : > { %3877 = vmatpush2.bf16.msra.mxu1 %v5685_v15  ;;  %3837 = vmatprep.subr.bf16.mxu0 %v5690_v16  ;;  %v5745_v15 = vld [vmem:[%s6290_s13 + $0x6a8] ss:$16 sps:$4 sm:$0xff]  }
 0x171   : > { %3878 = vmatprep.subr.bf16.mxu1 %v5693_v49 }
 0x173   : > { %3838 = vmatpush2.bf16.msra.mxu0 %v5688_v40  ;;  %v5751_v40 = vld [vmem:[%s6290_s13 + $0x688] ss:$16 sps:$4 sm:$0xff]  }
 0x174   : > { %3879 = vmatpush2.bf16.msra.mxu1 %v5691_v20  ;;  %3839 = vmatprep.subr.bf16.mxu0 %v5696_v21  ;;  %v5756_v20 = vld [vmem:[%s6290_s13 + $0x46c] ss:$16 sps:$4 sm:$0xff]  }
 0x175   : > { %3880 = vmatprep.subr.bf16.mxu1 %v5699_v22  ;;  %v5759_v21 = vld [vmem:[%s6290_s13 + $0x66c] ss:$16 sps:$4 sm:$0xff]   ;;  %v5754_v22 = vld [vmem:[%s6290_s13 + $0x468] ss:$16 sps:$4 sm:$0xff]  }
 0x177   : > { %3840 = vmatpush2.bf16.msra.mxu0 %v5694_v24  ;;  %v5757_v24 = vld [vmem:[%s6290_s13 + $0x668] ss:$16 sps:$4 sm:$0xff]  }
 0x178   : > { %3881 = vmatpush2.bf16.msra.mxu1 %v5697_v25  ;;  %3841 = vmatprep.subr.bf16.mxu0 %v5702_v27  ;;  %v5762_v25 = vld [vmem:[%s6290_s13 + $0x44c] ss:$16 sps:$4 sm:$0xff]  }
 0x179   : > { %3882 = vmatprep.subr.bf16.mxu1 %v5705_v28  ;;  %v5765_v27 = vld [vmem:[%s6290_s13 + $0x64c] ss:$16 sps:$4 sm:$0xff]   ;;  %v5760_v28 = vld [vmem:[%s6290_s13 + $0x448] ss:$16 sps:$4 sm:$0xff]  }
 0x17b   : > { %3842 = vmatpush2.bf16.msra.mxu0 %v5700_v29  ;;  %v5763_v29 = vld [vmem:[%s6290_s13 + $0x648] ss:$16 sps:$4 sm:$0xff]  }
 0x17c   : > { %3883 = vmatpush2.bf16.msra.mxu1 %v5703_v31  ;;  %3843 = vmatprep.subr.bf16.mxu0 %v5708_v6  ;;  %v5768_v31 = vld [vmem:[%s6290_s13 + $0x42c] ss:$16 sps:$4 sm:$0xff]  }
 0x17d   : > { %3884 = vmatprep.subr.bf16.mxu1 %v5711_v33  ;;  %v5771_v6 = vld [vmem:[%s6290_s13 + $0x62c] ss:$16 sps:$4 sm:$0xff]   ;;  %v5766_v33 = vld [vmem:[%s6290_s13 + $0x428] ss:$16 sps:$4 sm:$0xff]  }
 0x17f   : > { %3844 = vmatpush2.bf16.msra.mxu0 %v5706_v34  ;;  %v5769_v34 = vld [vmem:[%s6290_s13 + $0x628] ss:$16 sps:$4 sm:$0xff]  }
 0x180   : > { %3885 = vmatpush2.bf16.msra.mxu1 %v5709_v36  ;;  %3845 = vmatprep.subr.bf16.mxu0 %v5714_v38  ;;  %v5774_v36 = vld [vmem:[%s6290_s13 + $0x40c] ss:$16 sps:$4 sm:$0xff]  }
 0x181   : > { %3886 = vmatprep.subr.bf16.mxu1 %v5717_v39  ;;  %v5777_v38 = vld [vmem:[%s6290_s13 + $0x60c] ss:$16 sps:$4 sm:$0xff]   ;;  %v5772_v39 = vld [vmem:[%s6290_s13 + $0x408] ss:$16 sps:$4 sm:$0xff]  }
 0x183   : > { %3846 = vmatpush2.bf16.msra.mxu0 %v5712_v44  ;;  %v5775_v44 = vld [vmem:[%s6290_s13 + $0x608] ss:$16 sps:$4 sm:$0xff]  }
 0x184   : > { %3887 = vmatpush2.bf16.msra.mxu1 %v5715_v32  ;;  %3847 = vmatprep.subr.bf16.mxu0 %v5720_v45  ;;  %v5780_v32 = vld [vmem:[%s6290_s13 + $0x5ec] ss:$16 sps:$4 sm:$0xff]  }
 0x185   : > { %3888 = vmatprep.subr.bf16.mxu1 %v5723_v47  ;;  %v5783_v45 = vld [vmem:[%s6290_s13 + $0x7ec] ss:$16 sps:$4 sm:$0xff]   ;;  %v5778_v47 = vld [vmem:[%s6290_s13 + $0x5e8] ss:$16 sps:$4 sm:$0xff]  }
 0x187   : > { %3848 = vmatpush2.bf16.msra.mxu0 %v5718_v48  ;;  %v5781_v48 = vld [vmem:[%s6290_s13 + $0x7e8] ss:$16 sps:$4 sm:$0xff]  }
 0x188   : > { %3889 = vmatpush2.bf16.msra.mxu1 %v5721_v51  ;;  %3849 = vmatprep.subr.bf16.mxu0 %v5726_v60  ;;  %v5786_v51 = vld [vmem:[%s6290_s13 + $0x5cc] ss:$16 sps:$4 sm:$0xff]  }
 0x189   : > { %3890 = vmatprep.subr.bf16.mxu1 %v5729_v0  ;;  %v5789_v60 = vld [vmem:[%s6290_s13 + $0x7cc] ss:$16 sps:$4 sm:$0xff]   ;;  %v5784_v0 = vld [vmem:[%s6290_s13 + $0x5c8] ss:$16 sps:$4 sm:$0xff]  }
 0x18b   : > { %3850 = vmatpush2.bf16.msra.mxu0 %v5724_v52  ;;  %v5787_v52 = vld [vmem:[%s6290_s13 + $0x7c8] ss:$16 sps:$4 sm:$0xff]  }
 0x18c   : > { %3891 = vmatpush2.bf16.msra.mxu1 %v5727_v53  ;;  %3901 = vmatprep.subr.bf16.mxu0 %v5732_v35  ;;  %v5792_v53 = vld [vmem:[%s6290_s13 + $0x5ac] ss:$16 sps:$4 sm:$0xff]  }
 0x18d   : > { %3942 = vmatprep.subr.bf16.mxu1 %v5735_v56  ;;  %v5795_v35 = vld [vmem:[%s6290_s13 + $0x7ac] ss:$16 sps:$4 sm:$0xff]   ;;  %v5790_v56 = vld [vmem:[%s6290_s13 + $0x5a8] ss:$16 sps:$4 sm:$0xff]  }
 0x18e   : > { %v3607_v63 = vpop.f32.mrf.mxu0  ;;  %3852 = vmatmul.mubr.bf16.vlgmr.msra.gmra.mxu0 %v6389_v13 }
 0x18f   : > { %v3648_v1 = vpop.f32.mrf.mxu1  ;;  %3893 = vmatmul.mubr.bf16.vlgmr.msra.gmra.mxu1 %v6399_v18  ;;  %v3608_v2 = vadd.f32 %v3607_v63, %v6678_v37  ;;  %3902 = vmatpush1.bf16.msra.mxu0 %v5730_v57  ;;  %v5793_v57 = vld [vmem:[%s6290_s13 + $0x7a8] ss:$16 sps:$4 sm:$0xff]  }
 0x190   : > { %3943 = vmatpush1.bf16.msra.mxu1 %v5733_v58  ;;  %v3609_v5 = vpop.f32.mrf.mxu0  ;;  %3903 = vmatprep.subr.bf16.mxu0 %v5738_v61  ;;  %v5798_v58 = vld [vmem:[%s6290_s13 + $0x58c] ss:$16 sps:$4 sm:$0xff]   ;;  %v5799_v63 = vld [vmem:[%s6290_s13 + $0x788] ss:$16 sps:$4 sm:$0xff]  }
 0x191   : > { %v3650_v7 = vpop.f32.mrf.mxu1  ;;  %3944 = vmatprep.subr.bf16.mxu1 %v5741_v62  ;;  %v6751_v11 = vadd.f32 %v3648_v1, %v3608_v2  ;;  %v3610_v13 = vadd.f32 %v3609_v5, %v6684_v46  ;;  %3933 = vmatprep.mubr.bf16.mxu0 %v6395_v17  ;;  %v5750_v17 = vld [vmem:[%s6290_s13 + $0x48c] ss:$16 sps:$4 sm:$0xff]   ;;  %v5748_v46 = vld [vmem:[%s6290_s13 + $0x488] ss:$16 sps:$4 sm:$0xff]  }
 0x192   : > { %3974 = vmatprep.mubr.bf16.mxu1 %v6407_v23  ;;  %v3611_v18 = vpop.f32.mrf.mxu0  ;;  %v5753_v23 = vld [vmem:[%s6290_s13 + $0x68c] ss:$16 sps:$4 sm:$0xff]   ;;  %v5796_v62 = vld [vmem:[%s6290_s13 + $0x588] ss:$16 sps:$4 sm:$0xff]  }
 0x193   : > { %v3652_v37 = vpop.f32.mrf.mxu1  ;;  %v6756_v12 = vadd.f32 %v3650_v7, %v3610_v13  ;;  %3904 = vmatpush1.bf16.msra.mxu0 %v5736_v3  ;;  %v5801_v61 = vld [vmem:[%s6290_s13 + $0x78c] ss:$16 sps:$4 sm:$0xff]   ;;  %v5802_v3 = vld [vmem:[%s6290_s13 + $0x568] ss:$16 sps:$4 sm:$0xff]  }
 0x194   : > { %3945 = vmatpush1.bf16.msra.mxu1 %v5739_v4  ;;  %v3612_v16 = vpop.f32.mrf.mxu0  ;;  %3905 = vmatprep.subr.bf16.mxu0 %v5744_v8  ;;  %v5804_v1 = vld [vmem:[%s6290_s13 + $0x56c] ss:$16 sps:$4 sm:$0xff]   ;;  %v5805_v4 = vld [vmem:[%s6290_s13 + $0x768] ss:$16 sps:$4 sm:$0xff]  }
 0x195   : > { %v3653_v49 = vpop.f32.mrf.mxu1  ;;  %3946 = vmatprep.subr.bf16.mxu1 %v5747_v9  ;;  %v5807_v2 = vld [vmem:[%s6290_s13 + $0x76c] ss:$16 sps:$4 sm:$0xff]   ;;  %v5808_v8 = vld [vmem:[%s6290_s13 + $0x548] ss:$16 sps:$4 sm:$0xff]  }
 0x196   : > { %v5810_v5 = vld [vmem:[%s6290_s13 + $0x54c] ss:$16 sps:$4 sm:$0xff]   ;;  %v5811_v9 = vld [vmem:[%s6290_s13 + $0x748] ss:$16 sps:$4 sm:$0xff]  }
 0x197   : > { %3906 = vmatpush1.bf16.msra.mxu0 %v5742_v14  ;;  %v5813_v7 = vld [vmem:[%s6290_s13 + $0x74c] ss:$16 sps:$4 sm:$0xff]   ;;  %v5814_v37 = vld [vmem:[%s6290_s13 + $0x528] ss:$16 sps:$4 sm:$0xff]  }
 0x198   : > { %3947 = vmatpush1.bf16.msra.mxu1 %v5745_v15  ;;  %3907 = vmatprep.subr.bf16.mxu0 %v5750_v17  ;;  %v5816_v13 = vld [vmem:[%s6290_s13 + $0x52c] ss:$16 sps:$4 sm:$0xff]   ;;  %v5817_v14 = vld [vmem:[%s6290_s13 + $0x728] ss:$16 sps:$4 sm:$0xff]  }
 0x199   : > { %3948 = vmatprep.subr.bf16.mxu1 %v5753_v23  ;;  %v5819_v18 = vld [vmem:[%s6290_s13 + $0x72c] ss:$16 sps:$4 sm:$0xff]   ;;  %v5820_v49 = vld [vmem:[%s6290_s13 + $0x508] ss:$16 sps:$4 sm:$0xff]  }
 0x19a   : > { %v5822_v15 = vld [vmem:[%s6290_s13 + $0x50c] ss:$16 sps:$4 sm:$0xff]   ;;  %v5823_v17 = vld [vmem:[%s6290_s13 + $0x708] ss:$16 sps:$4 sm:$0xff]  }
 0x19b   : > { %3908 = vmatpush1.bf16.msra.mxu0 %v5748_v46  ;;  %v5825_v16 = vld [vmem:[%s6290_s13 + $0x70c] ss:$16 sps:$4 sm:$0xff]  }
 0x19c   : > { %3949 = vmatpush1.bf16.msra.mxu1 %v5751_v40  ;;  %3909 = vmatprep.subr.bf16.mxu0 %v5756_v20  ;;  %v5828_v23 = vld [vmem:[%s6290_s13 + $0x8ec] ss:$16 sps:$4 sm:$0xff]   ;;  %v5826_v40 = vld [vmem:[%s6290_s13 + $0x8e8] ss:$16 sps:$4 sm:$0xff]  }
 0x19d   : > { %3950 = vmatprep.subr.bf16.mxu1 %v5759_v21  ;;  %v5831_v46 = vld [vmem:[%s6290_s13 + $0xaec] ss:$16 sps:$4 sm:$0xff]   ;;  %v5829_v20 = vld [vmem:[%s6290_s13 + $0xae8] ss:$16 sps:$4 sm:$0xff]  }
 0x19e   : > { %v5834_v21 = vld [vmem:[%s6290_s13 + $0x8cc] ss:$16 sps:$4 sm:$0xff]  }
 0x19f   : > { %3910 = vmatpush1.bf16.msra.mxu0 %v5754_v22  ;;  %v5837_v22 = vld [vmem:[%s6290_s13 + $0xacc] ss:$16 sps:$4 sm:$0xff]  }
 0x1a0   : > { %3951 = vmatpush1.bf16.msra.mxu1 %v5757_v24  ;;  %3911 = vmatprep.subr.bf16.mxu0 %v5762_v25  ;;  %v5832_v24 = vld [vmem:[%s6290_s13 + $0x8c8] ss:$16 sps:$4 sm:$0xff]  }
 0x1a1   : > { %3952 = vmatprep.subr.bf16.mxu1 %v5765_v27  ;;  %v5835_v25 = vld [vmem:[%s6290_s13 + $0xac8] ss:$16 sps:$4 sm:$0xff]  }
 0x1a3   : > { %3912 = vmatpush1.bf16.msra.mxu0 %v5760_v28 }
 0x1a4   : > { %3953 = vmatpush1.bf16.msra.mxu1 %v5763_v29  ;;  %3913 = vmatprep.subr.bf16.mxu0 %v5768_v31  ;;  %v5840_v29 = vld [vmem:[%s6290_s13 + $0x8ac] ss:$16 sps:$4 sm:$0xff]  }
 0x1a5   : > { %3954 = vmatprep.subr.bf16.mxu1 %v5771_v6 }
 0x1a7   : > { %3914 = vmatpush1.bf16.msra.mxu0 %v5766_v33 }
 0x1a8   : > { %3955 = vmatpush1.bf16.msra.mxu1 %v5769_v34  ;;  %3915 = vmatprep.subr.bf16.mxu0 %v5774_v36  ;;  %v5843_v34 = vld [vmem:[%s6290_s13 + $0xaac] ss:$16 sps:$4 sm:$0xff]  }
 0x1a9   : > { %3956 = vmatprep.subr.bf16.mxu1 %v5777_v38 }
 0x1ab   : > { %3916 = vmatpush1.bf16.msra.mxu0 %v5772_v39 }
 0x1ac   : > { %3957 = vmatpush1.bf16.msra.mxu1 %v5775_v44  ;;  %3917 = vmatprep.subr.bf16.mxu0 %v5780_v32 }
 0x1ad   : > { %3958 = vmatprep.subr.bf16.mxu1 %v5783_v45  ;;  %v5846_v45 = vld [vmem:[%s6290_s13 + $0x88c] ss:$16 sps:$4 sm:$0xff]  }
 0x1af   : > { %3918 = vmatpush2.bf16.msra.mxu0 %v5778_v47  ;;  %v5849_v47 = vld [vmem:[%s6290_s13 + $0xa8c] ss:$16 sps:$4 sm:$0xff]  }
 0x1b0   : > { %3959 = vmatpush2.bf16.msra.mxu1 %v5781_v48  ;;  %3919 = vmatprep.subr.bf16.mxu0 %v5786_v51  ;;  %v5852_v48 = vld [vmem:[%s6290_s13 + $0x86c] ss:$16 sps:$4 sm:$0xff]  }
 0x1b1   : > { %3960 = vmatprep.subr.bf16.mxu1 %v5789_v60  ;;  %v5855_v51 = vld [vmem:[%s6290_s13 + $0xa6c] ss:$16 sps:$4 sm:$0xff]   ;;  %v5850_v60 = vld [vmem:[%s6290_s13 + $0x868] ss:$16 sps:$4 sm:$0xff]  }
 0x1b3   : > { %3920 = vmatpush2.bf16.msra.mxu0 %v5784_v0  ;;  %v5853_v0 = vld [vmem:[%s6290_s13 + $0xa68] ss:$16 sps:$4 sm:$0xff]  }
 0x1b4   : > { %3961 = vmatpush2.bf16.msra.mxu1 %v5787_v52  ;;  %3921 = vmatprep.subr.bf16.mxu0 %v5792_v53  ;;  %v5858_v52 = vld [vmem:[%s6290_s13 + $0x84c] ss:$16 sps:$4 sm:$0xff]  }
 0x1b5   : > { %3962 = vmatprep.subr.bf16.mxu1 %v5795_v35  ;;  %v5861_v53 = vld [vmem:[%s6290_s13 + $0xa4c] ss:$16 sps:$4 sm:$0xff]   ;;  %v5856_v35 = vld [vmem:[%s6290_s13 + $0x848] ss:$16 sps:$4 sm:$0xff]  }
 0x1b7   : > { %3922 = vmatpush2.bf16.msra.mxu0 %v5790_v56  ;;  %v5859_v56 = vld [vmem:[%s6290_s13 + $0xa48] ss:$16 sps:$4 sm:$0xff]  }
 0x1b8   : > { %3963 = vmatpush2.bf16.msra.mxu1 %v5793_v57  ;;  %3923 = vmatprep.subr.bf16.mxu0 %v5798_v58  ;;  %v5864_v57 = vld [vmem:[%s6290_s13 + $0x82c] ss:$16 sps:$4 sm:$0xff]  }
 0x1b9   : > { %3964 = vmatprep.subr.bf16.mxu1 %v5801_v61  ;;  %v5867_v58 = vld [vmem:[%s6290_s13 + $0xa2c] ss:$16 sps:$4 sm:$0xff]   ;;  %v5862_v61 = vld [vmem:[%s6290_s13 + $0x828] ss:$16 sps:$4 sm:$0xff]  }
 0x1bb   : > { %3924 = vmatpush2.bf16.msra.mxu0 %v5796_v62  ;;  %v5865_v62 = vld [vmem:[%s6290_s13 + $0xa28] ss:$16 sps:$4 sm:$0xff]  }
 0x1bc   : > { %3965 = vmatpush2.bf16.msra.mxu1 %v5799_v63  ;;  %3925 = vmatprep.subr.bf16.mxu0 %v5804_v1  ;;  %v5870_v63 = vld [vmem:[%s6290_s13 + $0x80c] ss:$16 sps:$4 sm:$0xff]  }
 0x1bd   : > { %3966 = vmatprep.subr.bf16.mxu1 %v5807_v2  ;;  %v5873_v1 = vld [vmem:[%s6290_s13 + $0xa0c] ss:$16 sps:$4 sm:$0xff]   ;;  %v5868_v2 = vld [vmem:[%s6290_s13 + $0x808] ss:$16 sps:$4 sm:$0xff]  }
 0x1bf   : > { %3926 = vmatpush2.bf16.msra.mxu0 %v5802_v3  ;;  %v5871_v3 = vld [vmem:[%s6290_s13 + $0xa08] ss:$16 sps:$4 sm:$0xff]  }
 0x1c0   : > { %3967 = vmatpush2.bf16.msra.mxu1 %v5805_v4  ;;  %3927 = vmatprep.subr.bf16.mxu0 %v5810_v5  ;;  %v5876_v4 = vld [vmem:[%s6290_s13 + $0x9ec] ss:$16 sps:$4 sm:$0xff]  }
 0x1c1   : > { %3968 = vmatprep.subr.bf16.mxu1 %v5813_v7  ;;  %v5879_v5 = vld [vmem:[%s6290_s13 + $0xbec] ss:$16 sps:$4 sm:$0xff]   ;;  %v5874_v7 = vld [vmem:[%s6290_s13 + $0x9e8] ss:$16 sps:$4 sm:$0xff]  }
 0x1c3   : > { %3928 = vmatpush2.bf16.msra.mxu0 %v5808_v8  ;;  %v5877_v8 = vld [vmem:[%s6290_s13 + $0xbe8] ss:$16 sps:$4 sm:$0xff]  }
 0x1c4   : > { %3969 = vmatpush2.bf16.msra.mxu1 %v5811_v9  ;;  %3929 = vmatprep.subr.bf16.mxu0 %v5816_v13  ;;  %v5882_v9 = vld [vmem:[%s6290_s13 + $0x9cc] ss:$16 sps:$4 sm:$0xff]  }
 0x1c5   : > { %3970 = vmatprep.subr.bf16.mxu1 %v5819_v18  ;;  %v5885_v13 = vld [vmem:[%s6290_s13 + $0xbcc] ss:$16 sps:$4 sm:$0xff]   ;;  %v5880_v18 = vld [vmem:[%s6290_s13 + $0x9c8] ss:$16 sps:$4 sm:$0xff]  }
 0x1c7   : > { %3930 = vmatpush2.bf16.msra.mxu0 %v5814_v37  ;;  %v5883_v37 = vld [vmem:[%s6290_s13 + $0xbc8] ss:$16 sps:$4 sm:$0xff]  }
 0x1c8   : > { %3971 = vmatpush2.bf16.msra.mxu1 %v5817_v14  ;;  %3931 = vmatprep.subr.bf16.mxu0 %v5822_v15  ;;  %v5888_v14 = vld [vmem:[%s6290_s13 + $0x9ac] ss:$16 sps:$4 sm:$0xff]  }
 0x1c9   : > { %3972 = vmatprep.subr.bf16.mxu1 %v5825_v16  ;;  %v5891_v15 = vld [vmem:[%s6290_s13 + $0xbac] ss:$16 sps:$4 sm:$0xff]   ;;  %v5886_v16 = vld [vmem:[%s6290_s13 + $0x9a8] ss:$16 sps:$4 sm:$0xff]  }
 0x1cb   : > { %3932 = vmatpush2.bf16.msra.mxu0 %v5820_v49  ;;  %v5889_v49 = vld [vmem:[%s6290_s13 + $0xba8] ss:$16 sps:$4 sm:$0xff]  }
 0x1cc   : > { %3973 = vmatpush2.bf16.msra.mxu1 %v5823_v17  ;;  %3983 = vmatprep.subr.bf16.mxu0 %v5828_v23  ;;  %v5894_v17 = vld [vmem:[%s6290_s13 + $0x98c] ss:$16 sps:$4 sm:$0xff]  }
 0x1cd   : > { %4024 = vmatprep.subr.bf16.mxu1 %v5831_v46  ;;  %v5897_v23 = vld [vmem:[%s6290_s13 + $0xb8c] ss:$16 sps:$4 sm:$0xff]   ;;  %v5892_v46 = vld [vmem:[%s6290_s13 + $0x988] ss:$16 sps:$4 sm:$0xff]  }
 0x1ce   : > { %v3689_v27 = vpop.f32.mrf.mxu0  ;;  %3934 = vmatmul.mubr.bf16.vlgmr.msra.gmra.mxu0 %v6472_v26  ;;  %v5838_v26 = vld [vmem:[%s6290_s13 + $0x8a8] ss:$16 sps:$4 sm:$0xff]  }
 0x1cf   : > { %v3730_v28 = vpop.f32.mrf.mxu1  ;;  %3975 = vmatmul.mubr.bf16.vlgmr.msra.gmra.mxu1 %v6479_v30  ;;  %v3690_v31 = vadd.f32 %v3689_v27, %v6751_v11  ;;  %3984 = vmatpush1.bf16.msra.mxu0 %v5826_v40  ;;  %v5841_v30 = vld [vmem:[%s6290_s13 + $0xaa8] ss:$16 sps:$4 sm:$0xff]   ;;  %v5909_v27 = vld [vmem:[%s6290_s13 + $0xb4c] ss:$16 sps:$4 sm:$0xff]  }
 0x1d0   : > { %4025 = vmatpush1.bf16.msra.mxu1 %v5829_v20  ;;  %v3691_v6 = vpop.f32.mrf.mxu0  ;;  %3985 = vmatprep.subr.bf16.mxu0 %v5834_v21  ;;  %v5895_v40 = vld [vmem:[%s6290_s13 + $0xb88] ss:$16 sps:$4 sm:$0xff]   ;;  %v5900_v20 = vld [vmem:[%s6290_s13 + $0x96c] ss:$16 sps:$4 sm:$0xff]  }
 0x1d1   : > { %v3732_v33 = vpop.f32.mrf.mxu1  ;;  %4026 = vmatprep.subr.bf16.mxu1 %v5837_v22  ;;  %v6831_v36 = vadd.f32 %v3730_v28, %v3690_v31  ;;  %v3692_v38 = vadd.f32 %v3691_v6, %v6756_v12  ;;  %4015 = vmatprep.mubr.bf16.mxu0 %v6503_v41  ;;  %v5844_v41 = vld [vmem:[%s6290_s13 + $0x888] ss:$16 sps:$4 sm:$0xff]   ;;  %v5903_v21 = vld [vmem:[%s6290_s13 + $0xb6c] ss:$16 sps:$4 sm:$0xff]  }
 0x1d2   : > { %4056 = vmatprep.mubr.bf16.mxu1 %v6508_v43  ;;  %v3693_v11 = vpop.f32.mrf.mxu0  ;;  %v5847_v43 = vld [vmem:[%s6290_s13 + $0xa88] ss:$16 sps:$4 sm:$0xff]   ;;  %v5912_v31 = vld [vmem:[%s6290_s13 + $0x92c] ss:$16 sps:$4 sm:$0xff]  }
 0x1d3   : > { %v3734_v39 = vpop.f32.mrf.mxu1  ;;  %v6838_v44 = vadd.f32 %v3732_v33, %v3692_v38  ;;  %3986 = vmatpush1.bf16.msra.mxu0 %v5832_v24  ;;  %v5898_v22 = vld [vmem:[%s6290_s13 + $0x968] ss:$16 sps:$4 sm:$0xff]   ;;  %v5915_v6 = vld [vmem:[%s6290_s13 + $0xb2c] ss:$16 sps:$4 sm:$0xff]  }
 0x1d4   : > { %4027 = vmatpush1.bf16.msra.mxu1 %v5835_v25  ;;  %v3694_v32 = vpop.f32.mrf.mxu0  ;;  %3987 = vmatprep.subr.bf16.mxu0 %v5840_v29  ;;  %v5901_v24 = vld [vmem:[%s6290_s13 + $0xb68] ss:$16 sps:$4 sm:$0xff]   ;;  %v5906_v25 = vld [vmem:[%s6290_s13 + $0x94c] ss:$16 sps:$4 sm:$0xff]  }
 0x1d5   : > { %v3735_v12 = vpop.f32.mrf.mxu1  ;;  %4028 = vmatprep.subr.bf16.mxu1 %v5843_v34  ;;  %v5904_v28 = vld [vmem:[%s6290_s13 + $0x948] ss:$16 sps:$4 sm:$0xff]   ;;  %v5918_v38 = vld [vmem:[%s6290_s13 + $0x90c] ss:$16 sps:$4 sm:$0xff]  }
 0x1d6   : > { %v5907_v29 = vld [vmem:[%s6290_s13 + $0xb48] ss:$16 sps:$4 sm:$0xff]   ;;  %v5924_v39 = vld [vmem:[%s6290_s13 + $0xcec] ss:$16 sps:$4 sm:$0xff]  }
 0x1d7   : > { %3988 = vmatpush1.bf16.msra.mxu0 %v5838_v26  ;;  %v5910_v33 = vld [vmem:[%s6290_s13 + $0x928] ss:$16 sps:$4 sm:$0xff]   ;;  %v5921_v26 = vld [vmem:[%s6290_s13 + $0xb0c] ss:$16 sps:$4 sm:$0xff]  }
 0x1d8   : > { %4029 = vmatpush1.bf16.msra.mxu1 %v5841_v30  ;;  %3989 = vmatprep.subr.bf16.mxu0 %v5846_v45  ;;  %v5913_v34 = vld [vmem:[%s6290_s13 + $0xb28] ss:$16 sps:$4 sm:$0xff]   ;;  %v5927_v32 = vld [vmem:[%s6290_s13 + $0xeec] ss:$16 sps:$4 sm:$0xff]  }
 0x1d9   : > { %4030 = vmatprep.subr.bf16.mxu1 %v5849_v47  ;;  %v5916_v30 = vld [vmem:[%s6290_s13 + $0x908] ss:$16 sps:$4 sm:$0xff]   ;;  %v5930_v47 = vld [vmem:[%s6290_s13 + $0xccc] ss:$16 sps:$4 sm:$0xff]  }
 0x1da   : > { %v5919_v11 = vld [vmem:[%s6290_s13 + $0xb08] ss:$16 sps:$4 sm:$0xff]  }
 0x1db   : > { %3990 = vmatpush1.bf16.msra.mxu0 %v5844_v41  ;;  %v5922_v12 = vld [vmem:[%s6290_s13 + $0xce8] ss:$16 sps:$4 sm:$0xff]   ;;  %v5933_v41 = vld [vmem:[%s6290_s13 + $0xecc] ss:$16 sps:$4 sm:$0xff]  }
 0x1dc   : > { %4031 = vmatpush1.bf16.msra.mxu1 %v5847_v43  ;;  %3991 = vmatprep.subr.bf16.mxu0 %v5852_v48  ;;  %v5925_v45 = vld [vmem:[%s6290_s13 + $0xee8] ss:$16 sps:$4 sm:$0xff]  }
 0x1dd   : > { %4032 = vmatprep.subr.bf16.mxu1 %v5855_v51 }
 0x1df   : > { %3992 = vmatpush1.bf16.msra.mxu0 %v5850_v60  ;;  %v5928_v60 = vld [vmem:[%s6290_s13 + $0xcc8] ss:$16 sps:$4 sm:$0xff]  }
 0x1e0   : > { %4033 = vmatpush1.bf16.msra.mxu1 %v5853_v0  ;;  %3993 = vmatprep.subr.bf16.mxu0 %v5858_v52  ;;  %v5931_v0 = vld [vmem:[%s6290_s13 + $0xec8] ss:$16 sps:$4 sm:$0xff]  }
 0x1e1   : > { %4034 = vmatprep.subr.bf16.mxu1 %v5861_v53 }
 0x1e3   : > { %3994 = vmatpush1.bf16.msra.mxu0 %v5856_v35  ;;  %v5936_v35 = vld [vmem:[%s6290_s13 + $0xcac] ss:$16 sps:$4 sm:$0xff]  }
 0x1e4   : > { %4035 = vmatpush1.bf16.msra.mxu1 %v5859_v56  ;;  %3995 = vmatprep.subr.bf16.mxu0 %v5864_v57  ;;  %v5934_v57 = vld [vmem:[%s6290_s13 + $0xca8] ss:$16 sps:$4 sm:$0xff]  }
 0x1e5   : > { %4036 = vmatprep.subr.bf16.mxu1 %v5867_v58  ;;  %v5937_v58 = vld [vmem:[%s6290_s13 + $0xea8] ss:$16 sps:$4 sm:$0xff]  }
 0x1e7   : > { %3996 = vmatpush1.bf16.msra.mxu0 %v5862_v61 }
 0x1e8   : > { %4037 = vmatpush1.bf16.msra.mxu1 %v5865_v62  ;;  %3997 = vmatprep.subr.bf16.mxu0 %v5870_v63  ;;  %v5942_v63 = vld [vmem:[%s6290_s13 + $0xc8c] ss:$16 sps:$4 sm:$0xff]  }
 0x1e9   : > { %4038 = vmatprep.subr.bf16.mxu1 %v5873_v1  ;;  %v5943_v1 = vld [vmem:[%s6290_s13 + $0xe88] ss:$16 sps:$4 sm:$0xff]  }
 0x1eb   : > { %3998 = vmatpush1.bf16.msra.mxu0 %v5868_v2  ;;  %v5948_v2 = vld [vmem:[%s6290_s13 + $0xc6c] ss:$16 sps:$4 sm:$0xff]  }
 0x1ec   : > { %4039 = vmatpush1.bf16.msra.mxu1 %v5871_v3  ;;  %3999 = vmatprep.subr.bf16.mxu0 %v5876_v4  ;;  %v5951_v3 = vld [vmem:[%s6290_s13 + $0xe6c] ss:$16 sps:$4 sm:$0xff]   ;;  %v5946_v4 = vld [vmem:[%s6290_s13 + $0xc68] ss:$16 sps:$4 sm:$0xff]  }
 0x1ed   : > { %4040 = vmatprep.subr.bf16.mxu1 %v5879_v5  ;;  %v5949_v5 = vld [vmem:[%s6290_s13 + $0xe68] ss:$16 sps:$4 sm:$0xff]  }
 0x1ef   : > { %4000 = vmatpush2.bf16.msra.mxu0 %v5874_v7  ;;  %v5954_v7 = vld [vmem:[%s6290_s13 + $0xc4c] ss:$16 sps:$4 sm:$0xff]  }
 0x1f0   : > { %4041 = vmatpush2.bf16.msra.mxu1 %v5877_v8  ;;  %4001 = vmatprep.subr.bf16.mxu0 %v5882_v9  ;;  %v5957_v8 = vld [vmem:[%s6290_s13 + $0xe4c] ss:$16 sps:$4 sm:$0xff]   ;;  %v5952_v9 = vld [vmem:[%s6290_s13 + $0xc48] ss:$16 sps:$4 sm:$0xff]  }
 0x1f1   : > { %4042 = vmatprep.subr.bf16.mxu1 %v5885_v13  ;;  %v5955_v13 = vld [vmem:[%s6290_s13 + $0xe48] ss:$16 sps:$4 sm:$0xff]  }
 0x1f3   : > { %4002 = vmatpush2.bf16.msra.mxu0 %v5880_v18  ;;  %v5960_v18 = vld [vmem:[%s6290_s13 + $0xc2c] ss:$16 sps:$4 sm:$0xff]  }
 0x1f4   : > { %4043 = vmatpush2.bf16.msra.mxu1 %v5883_v37  ;;  %4003 = vmatprep.subr.bf16.mxu0 %v5888_v14  ;;  %v5963_v37 = vld [vmem:[%s6290_s13 + $0xe2c] ss:$16 sps:$4 sm:$0xff]   ;;  %v5958_v14 = vld [vmem:[%s6290_s13 + $0xc28] ss:$16 sps:$4 sm:$0xff]  }
 0x1f5   : > { %4044 = vmatprep.subr.bf16.mxu1 %v5891_v15  ;;  %v5961_v15 = vld [vmem:[%s6290_s13 + $0xe28] ss:$16 sps:$4 sm:$0xff]  }
 0x1f7   : > { %4004 = vmatpush2.bf16.msra.mxu0 %v5886_v16  ;;  %v5966_v16 = vld [vmem:[%s6290_s13 + $0xc0c] ss:$16 sps:$4 sm:$0xff]  }
 0x1f8   : > { %4045 = vmatpush2.bf16.msra.mxu1 %v5889_v49  ;;  %4005 = vmatprep.subr.bf16.mxu0 %v5894_v17  ;;  %v5969_v49 = vld [vmem:[%s6290_s13 + $0xe0c] ss:$16 sps:$4 sm:$0xff]   ;;  %v5964_v17 = vld [vmem:[%s6290_s13 + $0xc08] ss:$16 sps:$4 sm:$0xff]  }
 0x1f9   : > { %4046 = vmatprep.subr.bf16.mxu1 %v5897_v23  ;;  %v5967_v23 = vld [vmem:[%s6290_s13 + $0xe08] ss:$16 sps:$4 sm:$0xff]  }
 0x1fb   : > { %4006 = vmatpush2.bf16.msra.mxu0 %v5892_v46  ;;  %v5972_v46 = vld [vmem:[%s6290_s13 + $0xdec] ss:$16 sps:$4 sm:$0xff]  }
 0x1fc   : > { %4047 = vmatpush2.bf16.msra.mxu1 %v5895_v40  ;;  %4007 = vmatprep.subr.bf16.mxu0 %v5900_v20  ;;  %v5975_v40 = vld [vmem:[%s6290_s13 + $0xfec] ss:$16 sps:$4 sm:$0xff]   ;;  %v5970_v20 = vld [vmem:[%s6290_s13 + $0xde8] ss:$16 sps:$4 sm:$0xff]  }
 0x1fd   : > { %4048 = vmatprep.subr.bf16.mxu1 %v5903_v21  ;;  %v5973_v21 = vld [vmem:[%s6290_s13 + $0xfe8] ss:$16 sps:$4 sm:$0xff]  }
 0x1ff   : > { %4008 = vmatpush2.bf16.msra.mxu0 %v5898_v22  ;;  %v5978_v22 = vld [vmem:[%s6290_s13 + $0xdcc] ss:$16 sps:$4 sm:$0xff]  }
 0x200   : > { %4049 = vmatpush2.bf16.msra.mxu1 %v5901_v24  ;;  %4009 = vmatprep.subr.bf16.mxu0 %v5906_v25  ;;  %v5981_v24 = vld [vmem:[%s6290_s13 + $0xfcc] ss:$16 sps:$4 sm:$0xff]   ;;  %v5976_v25 = vld [vmem:[%s6290_s13 + $0xdc8] ss:$16 sps:$4 sm:$0xff]  }
 0x201   : > { %4050 = vmatprep.subr.bf16.mxu1 %v5909_v27  ;;  %v5979_v27 = vld [vmem:[%s6290_s13 + $0xfc8] ss:$16 sps:$4 sm:$0xff]  }
 0x203   : > { %4010 = vmatpush2.bf16.msra.mxu0 %v5904_v28  ;;  %v5984_v28 = vld [vmem:[%s6290_s13 + $0xdac] ss:$16 sps:$4 sm:$0xff]  }
 0x204   : > { %4051 = vmatpush2.bf16.msra.mxu1 %v5907_v29  ;;  %4011 = vmatprep.subr.bf16.mxu0 %v5912_v31  ;;  %v5987_v29 = vld [vmem:[%s6290_s13 + $0xfac] ss:$16 sps:$4 sm:$0xff]   ;;  %v5982_v31 = vld [vmem:[%s6290_s13 + $0xda8] ss:$16 sps:$4 sm:$0xff]  }
 0x205   : > { %4052 = vmatprep.subr.bf16.mxu1 %v5915_v6  ;;  %v5985_v6 = vld [vmem:[%s6290_s13 + $0xfa8] ss:$16 sps:$4 sm:$0xff]  }
 0x207   : > { %4012 = vmatpush2.bf16.msra.mxu0 %v5910_v33  ;;  %v5990_v33 = vld [vmem:[%s6290_s13 + $0xd8c] ss:$16 sps:$4 sm:$0xff]  }
 0x208   : > { %4053 = vmatpush2.bf16.msra.mxu1 %v5913_v34  ;;  %4013 = vmatprep.subr.bf16.mxu0 %v5918_v38  ;;  %v5993_v34 = vld [vmem:[%s6290_s13 + $0xf8c] ss:$16 sps:$4 sm:$0xff]   ;;  %v5988_v38 = vld [vmem:[%s6290_s13 + $0xd88] ss:$16 sps:$4 sm:$0xff]  }
 0x209   : > { %4054 = vmatprep.subr.bf16.mxu1 %v5921_v26  ;;  %v5991_v26 = vld [vmem:[%s6290_s13 + $0xf88] ss:$16 sps:$4 sm:$0xff]  }
 0x20b   : > { %4014 = vmatpush2.bf16.msra.mxu0 %v5916_v30  ;;  %v5996_v30 = vld [vmem:[%s6290_s13 + $0xd6c] ss:$16 sps:$4 sm:$0xff]  }
 0x20c   : > { %4055 = vmatpush2.bf16.msra.mxu1 %v5919_v11  ;;  %4065 = vmatprep.subr.bf16.mxu0 %v5924_v39  ;;  %v5999_v11 = vld [vmem:[%s6290_s13 + $0xf6c] ss:$16 sps:$4 sm:$0xff]   ;;  %v5994_v39 = vld [vmem:[%s6290_s13 + $0xd68] ss:$16 sps:$4 sm:$0xff]  }
 0x20d   : > { %4106 = vmatprep.subr.bf16.mxu1 %v5927_v32  ;;  %v5997_v32 = vld [vmem:[%s6290_s13 + $0xf68] ss:$16 sps:$4 sm:$0xff]  }
 0x20e   : > { %v3771_v43 = vpop.f32.mrf.mxu0  ;;  %4016 = vmatmul.mubr.bf16.vlgmr.msra.gmra.mxu0 %v6573_v50  ;;  %v5939_v50 = vld [vmem:[%s6290_s13 + $0xeac] ss:$16 sps:$4 sm:$0xff]  }
 0x20f   : > { %v3812_v48 = vpop.f32.mrf.mxu1  ;;  %4057 = vmatmul.mubr.bf16.vlgmr.msra.gmra.mxu1 %v6583_v55  ;;  %v3772_v51 = vadd.f32 %v3771_v43, %v6831_v36  ;;  %4066 = vmatpush1.bf16.msra.mxu0 %v5922_v12  ;;  %v6002_v12 = vld [vmem:[%s6290_s13 + $0xd4c] ss:$16 sps:$4 sm:$0xff]  }
 0x210   : > { %4107 = vmatpush1.bf16.msra.mxu1 %v5925_v45  ;;  %v6903_v52 = vpop.f32.mrf.mxu0  ;;  %4067 = vmatprep.subr.bf16.mxu0 %v5930_v47  ;;  %v6005_v45 = vld [vmem:[%s6290_s13 + $0xf4c] ss:$16 sps:$4 sm:$0xff]   ;;  %v6000_v47 = vld [vmem:[%s6290_s13 + $0xd48] ss:$16 sps:$4 sm:$0xff]  }
 0x211   : > { %v6905_v53 = vpop.f32.mrf.mxu1  ;;  %4108 = vmatprep.subr.bf16.mxu1 %v5933_v41  ;;  %v6909_v56 = vadd.f32 %v3812_v48, %v3772_v51  ;;  %4097 = vmatprep.mubr.bf16.mxu0 %v6579_v54  ;;  %v5945_v54 = vld [vmem:[%s6290_s13 + $0xe8c] ss:$16 sps:$4 sm:$0xff]   ;;  %v6003_v41 = vld [vmem:[%s6290_s13 + $0xf48] ss:$16 sps:$4 sm:$0xff]   ;;  %v3774_v51 = vadd.f32 %v6903_v52, %v6838_v44  ;;  %v805_v44 = vsub.s32 2, %v6341_v42 }
 0x212   : > { %4138 = vmatprep.mubr.bf16.mxu1 %v6591_v59  ;;  %v3775_v55 = vpop.f32.mrf.mxu0  ;;  %v5940_v59 = vld [vmem:[%s6290_s13 + $0xc88] ss:$16 sps:$4 sm:$0xff]   ;;  %v6008_v43 = vld [vmem:[%s6290_s13 + $0xd2c] ss:$16 sps:$4 sm:$0xff]  }
 0x213   : > { %v3816_v36 = vpop.f32.mrf.mxu1  ;;  %4068 = vmatpush1.bf16.msra.mxu0 %v5928_v60  ;;  %v6011_v48 = vld [vmem:[%s6290_s13 + $0xf2c] ss:$16 sps:$4 sm:$0xff]   ;;  %v6006_v60 = vld [vmem:[%s6290_s13 + $0xd28] ss:$16 sps:$4 sm:$0xff]   ;;  %v3815_v55 = vadd.f32 %v6905_v53, %v3774_v51  ;;  %v6020_v53 = vld [vmem:[%s6821_s26 + $0x70] sm:$0xff]  }
 0x214   : > { %4109 = vmatpush1.bf16.msra.mxu1 %v5931_v0  ;;  %v3776_v61 = vpop.f32.mrf.mxu0  ;;  %4069 = vmatprep.subr.bf16.mxu0 %v5936_v35  ;;  %v6009_v0 = vld [vmem:[%s6290_s13 + $0xf28] ss:$16 sps:$4 sm:$0xff]   ;;  %v6014_v35 = vld [vmem:[%s6290_s13 + $0xd0c] ss:$16 sps:$4 sm:$0xff]  }
 0x215   : > { %v3817_v62 = vpop.f32.mrf.mxu1  ;;  %4110 = vmatprep.subr.bf16.mxu1 %v5939_v50  ;;  %v6017_v50 = vld [vmem:[%s6290_s13 + $0xf0c] ss:$16 sps:$4 sm:$0xff]   ;;  %v6012_v36 = vld [vmem:[%s6290_s13 + $0xd08] ss:$16 sps:$4 sm:$0xff]   ;;  %v809_v61 = vsub.s32 3, %v6341_v42 }
 0x216   : > { %v6018_v52 = vld [vmem:[%s6821_s26 + $0x78] sm:$0xff]   ;;  %v6050_v62 = vld [vmem:[%s6296_s7] sm:$0xf] }
 0x217   : > { %4070 = vmatpush1.bf16.msra.mxu0 %v5934_v57  ;;  %v6015_v57 = vld [vmem:[%s6290_s13 + $0xf08] ss:$16 sps:$4 sm:$0xff]  }
 0x218   : > { %4111 = vmatpush1.bf16.msra.mxu1 %v5937_v58  ;;  %4071 = vmatprep.subr.bf16.mxu0 %v5942_v63  ;;  %v4148_v58 = vmax.f32 %v3815_v55, 0.0  ;;  %v806_v63 = vrot.slane %v6050_v62, %v805_v44  ;;  %v6049_v44 = vld [vmem:[%s6821_s26 + $0x80] sm:$0xff]  }
 0x219   : > { %4112 = vmatprep.subr.bf16.mxu1 %v5945_v54  ;;  %v6019_v54 = vld [vmem:[%s6821_s26 + $0x38] sm:$0xff]  }
 0x21b   : > { %4072 = vmatpush1.bf16.msra.mxu0 %v5940_v59  ;;  %v4152_v59 = vpack.c.bf16 %v4148_v58, %v4148_v58 }
 0x21c   : > { %4113 = vmatpush1.bf16.msra.mxu1 %v5943_v1  ;;  %4073 = vmatprep.subr.bf16.mxu0 %v5948_v2  ;;  %v810_v1 = vrot.slane %v6050_v62, %v809_v61 }
 0x21d   : > { %4114 = vmatprep.subr.bf16.mxu1 %v5951_v3 }
 0x21f   : > { %4074 = vmatpush1.bf16.msra.mxu0 %v5946_v4  ;;  %v6021_v4 = vld [vmem:[%s6821_s26 + $0x30] sm:$0xff]  }
 0x220   : > { %4115 = vmatpush1.bf16.msra.mxu1 %v5949_v5  ;;  %4075 = vmatprep.subr.bf16.mxu0 %v5954_v7 }
 0x221   : > { %4116 = vmatprep.subr.bf16.mxu1 %v5957_v8  ;;  %v6022_v8 = vld [vmem:[%s6821_s26 + $0x68] sm:$0xff]  }
 0x223   : > { %4076 = vmatpush1.bf16.msra.mxu0 %v5952_v9 }
 0x224   : > { %4117 = vmatpush1.bf16.msra.mxu1 %v5955_v13  ;;  %4077 = vmatprep.subr.bf16.mxu0 %v5960_v18 }
 0x225   : > { %4118 = vmatprep.subr.bf16.mxu1 %v5963_v37 }
 0x227   : > { %4078 = vmatpush1.bf16.msra.mxu0 %v5958_v14  ;;  %v6024_v14 = vld [vmem:[%s6821_s26 + $0x60] sm:$0xff]  }
 0x228   : > { %4119 = vmatpush1.bf16.msra.mxu1 %v5961_v15  ;;  %4079 = vmatprep.subr.bf16.mxu0 %v5966_v16 }
 0x229   : > { %4120 = vmatprep.subr.bf16.mxu1 %v5969_v49  ;;  %v6034_v49 = vld [vmem:[%s6821_s26 + $0xf8] sm:$0xff]  }
 0x22b   : > { %4080 = vmatpush1.bf16.msra.mxu0 %v5964_v17  ;;  %v6035_v17 = vld [vmem:[%s6821_s26 + $0xb8] sm:$0xff]  }
 0x22c   : > { %4121 = vmatpush1.bf16.msra.mxu1 %v5967_v23  ;;  %4081 = vmatprep.subr.bf16.mxu0 %v5972_v46  ;;  %v6036_v23 = vld [vmem:[%s6821_s26 + $0xf0] sm:$0xff]   ;;  %v6025_v46 = vld [vmem:[%s6821_s26 + $0x20] sm:$0xff]  }
 0x22d   : > { %4122 = vmatprep.subr.bf16.mxu1 %v5975_v40  ;;  %v6037_v40 = vld [vmem:[%s6821_s26 + $0xb0] sm:$0xff]  }
 0x22f   : > { %4082 = vmatpush2.bf16.msra.mxu0 %v5970_v20  ;;  %v6026_v20 = vld [vmem:[%s6821_s26 + $0x58] sm:$0xff]  }
 0x230   : > { %4123 = vmatpush2.bf16.msra.mxu1 %v5973_v21  ;;  %4083 = vmatprep.subr.bf16.mxu0 %v5978_v22  ;;  %v6038_v21 = vld [vmem:[%s6821_s26 + $0xe8] sm:$0xff]   ;;  %v6027_v22 = vld [vmem:[%s6821_s26 + $0x18] sm:$0xff]  }
 0x231   : > { %4124 = vmatprep.subr.bf16.mxu1 %v5981_v24  ;;  %v6039_v24 = vld [vmem:[%s6821_s26 + $0xa8] sm:$0xff]  }
 0x233   : > { %4084 = vmatpush2.bf16.msra.mxu0 %v5976_v25  ;;  %v6028_v25 = vld [vmem:[%s6821_s26 + $0x50] sm:$0xff]  }
 0x234   : > { %4125 = vmatpush2.bf16.msra.mxu1 %v5979_v27  ;;  %4085 = vmatprep.subr.bf16.mxu0 %v5984_v28  ;;  %v6040_v27 = vld [vmem:[%s6821_s26 + $0xe0] sm:$0xff]   ;;  %v6029_v28 = vld [vmem:[%s6821_s26 + $0x10] sm:$0xff]  }
 0x235   : > { %4126 = vmatprep.subr.bf16.mxu1 %v5987_v29  ;;  %v6041_v29 = vld [vmem:[%s6821_s26 + $0xa0] sm:$0xff]  }
 0x237   : > { %4086 = vmatpush2.bf16.msra.mxu0 %v5982_v31  ;;  %v6030_v31 = vld [vmem:[%s6821_s26 + $0x48] sm:$0xff]  }
 0x238   : > { %4127 = vmatpush2.bf16.msra.mxu1 %v5985_v6  ;;  %4087 = vmatprep.subr.bf16.mxu0 %v5990_v33  ;;  %v6042_v6 = vld [vmem:[%s6821_s26 + $0xd8] sm:$0xff]   ;;  %v6031_v33 = vld [vmem:[%s6821_s26 + $0x8] sm:$0xff]  }
 0x239   : > { %4128 = vmatprep.subr.bf16.mxu1 %v5993_v34  ;;  %v6043_v34 = vld [vmem:[%s6821_s26 + $0x98] sm:$0xff]  }
 0x23b   : > { %4088 = vmatpush2.bf16.msra.mxu0 %v5988_v38  ;;  %v6032_v38 = vld [vmem:[%s6821_s26 + $0x40] sm:$0xff]  }
 0x23c   : > { %4129 = vmatpush2.bf16.msra.mxu1 %v5991_v26  ;;  %4089 = vmatprep.subr.bf16.mxu0 %v5996_v30  ;;  %v6033_v26 = vld [vmem:[%s6821_s26] sm:$0xff]   ;;  %v4147_v30 = vmax.f32 %v6909_v56, 0.0  ;;  %v6047_v56 = vld [vmem:[%s6821_s26 + $0x88] sm:$0xff]  }
 0x23d   : > { %4130 = vmatprep.subr.bf16.mxu1 %v5999_v11 }
 0x23e   : > { %v4151_v11 = vpack.c.bf16 %v4147_v30, %v4147_v30 }
 0x23f   : > { %4090 = vmatpush2.bf16.msra.mxu0 %v5994_v39  ;;  %v6044_v39 = vld [vmem:[%s6821_s26 + $0xd0] sm:$0xff]  }
 0x240   : > { %4131 = vmatpush2.bf16.msra.mxu1 %v5997_v32  ;;  %4091 = vmatprep.subr.bf16.mxu0 %v6002_v12  ;;  %v6045_v32 = vld [vmem:[%s6821_s26 + $0x90] sm:$0xff]  }
 0x241   : > { %4132 = vmatprep.subr.bf16.mxu1 %v6005_v45 }
 0x243   : > { %4092 = vmatpush2.bf16.msra.mxu0 %v6000_v47 }
 0x244   : > { %4133 = vmatpush2.bf16.msra.mxu1 %v6003_v41  ;;  %4093 = vmatprep.subr.bf16.mxu0 %v6008_v43 }
 0x245   : > { %4134 = vmatprep.subr.bf16.mxu1 %v6011_v48  ;;  %v6046_v48 = vld [vmem:[%s6821_s26 + $0xc8] sm:$0xff]  }
 0x247   : > { %4094 = vmatpush2.bf16.msra.mxu0 %v6006_v60 }
 0x248   : > { %4135 = vmatpush2.bf16.msra.mxu1 %v6009_v0  ;;  %4095 = vmatprep.subr.bf16.mxu0 %v6014_v35 }
 0x249   : > { %4136 = vmatprep.subr.bf16.mxu1 %v6017_v50 }
 0x24b   : > { %4096 = vmatpush2.bf16.msra.mxu0 %v6012_v36 }
 0x24c   : > { %4137 = vmatpush2.bf16.msra.mxu1 %v6015_v57  ;;  %5156 = vmatprep.subr.bf16.mxu0 %v6018_v52  ;;  %v6048_v57 = vld [vmem:[%s6821_s26 + $0xc0] sm:$0xff]  }
 0x24d   : > { %5178 = vmatprep.subr.bf16.mxu1 %v6034_v49 }
 0x24e   : > { %v3853_v2 = vpop.f32.mrf.mxu0  ;;  %4098 = vmatmul.mubr.bf16.vlgmr.msra.gmra.mxu0 %v6657_v10 }
 0x24f   : > { %v3894_v3 = vpop.f32.mrf.mxu1  ;;  %4139 = vmatmul.mubr.bf16.vlgmr.msra.gmra.mxu1 %v6666_v19  ;;  %v3854_v42 = vadd.f32 %v3853_v2, %v806_v63  ;;  %5157 = vmatpush3.bf16.msra.mxu0 %v6019_v54  ;;  %v6023_v19 = vld [vmem:[%s6821_s26 + $0x28] sm:$0xff]  }
 0x250   : > { %4443 = vmatprep.mubr.bf16.mxu0 %v4152_v59  ;;  %v3855_v5 = vpop.f32.mrf.mxu0  ;;  %5158 = vmatprep.subr.bf16.mxu0 %v6020_v53 }
 0x251   : > { %v3896_v7 = vpop.f32.mrf.mxu1  ;;  %v3895_v9 = vadd.f32 %v3894_v3, %v3854_v42  ;;  %v3856_v13 = vadd.f32 %v3855_v5, %v810_v1  ;;  %5179 = vmatpush3.bf16.msra.mxu1 %v6035_v17 }
 0x252   : > { %v3857_v18 = vpop.f32.mrf.mxu0  ;;  %5180 = vmatprep.subr.bf16.mxu1 %v6036_v23 }
 0x253   : > { %v3898_v10 = vpop.f32.mrf.mxu1  ;;  %v3897_v37 = vadd.f32 %v3896_v7, %v3856_v13  ;;  %5159 = vmatpush3.bf16.msra.mxu0 %v6021_v4 }
 0x254   : > { %v3858_v15 = vpop.f32.mrf.mxu0  ;;  %5160 = vmatprep.subr.bf16.mxu0 %v6022_v8 }
 0x255   : > { %v3899_v16 = vpop.f32.mrf.mxu1  ;;  %5181 = vmatpush3.bf16.msra.mxu1 %v6037_v40 }
 0x256   : > { %5182 = vmatprep.subr.bf16.mxu1 %v6038_v21 }
 0x257   : > { %5161 = vmatpush3.bf16.msra.mxu0 %v6023_v19 }
 0x258   : > { %5162 = vmatprep.subr.bf16.mxu0 %v6024_v14 }
 0x259   : > { %5183 = vmatpush3.bf16.msra.mxu1 %v6039_v24 }
 0x25a   : > { %5184 = vmatprep.subr.bf16.mxu1 %v6040_v27 }
 0x25b   : > { %5163 = vmatpush3.bf16.msra.mxu0 %v6025_v46 }
 0x25c   : > { %5164 = vmatprep.subr.bf16.mxu0 %v6026_v20 }
 0x25d   : > { %5185 = vmatpush3.bf16.msra.mxu1 %v6041_v29 }
 0x25e   : > { %5186 = vmatprep.subr.bf16.mxu1 %v6042_v6 }
 0x25f   : > { %5165 = vmatpush3.bf16.msra.mxu0 %v6027_v22 }
 0x260   : > { %5166 = vmatprep.subr.bf16.mxu0 %v6028_v25 }
 0x261   : > { %5187 = vmatpush3.bf16.msra.mxu1 %v6043_v34 }
 0x262   : > { %5188 = vmatprep.subr.bf16.mxu1 %v6044_v39 }
 0x263   : > { %5167 = vmatpush3.bf16.msra.mxu0 %v6029_v28 }
 0x264   : > { %5168 = vmatprep.subr.bf16.mxu0 %v6030_v31 }
 0x265   : > { %5189 = vmatpush3.bf16.msra.mxu1 %v6045_v32 }
 0x266   : > { %5190 = vmatprep.subr.bf16.mxu1 %v6046_v48 }
 0x267   : > { %5169 = vmatpush3.bf16.msra.mxu0 %v6031_v33 }
 0x268   : > { %5170 = vmatprep.subr.bf16.mxu0 %v6032_v38 }
 0x269   : > { %5191 = vmatpush3.bf16.msra.mxu1 %v6047_v56 }
 0x26a   : > { %5192 = vmatprep.subr.bf16.mxu1 %v6048_v57 }
 0x26b   : > { %5171 = vmatpush3.bf16.msra.mxu0 %v6033_v26 }
 0x26d   : > { %5193 = vmatpush3.bf16.msra.mxu1 %v6049_v44 }
 0x26e   : > { %4444 = vmatmul.mubr.bf16.vlgmr.msra.gmra.mxu0 %v4151_v11 }
 0x28e   : > { %v3935_v12 = vpop.f32.mrf.mxu0 }
 0x28f   : > { %v3976_v45 = vpop.f32.mrf.mxu1  ;;  %v3936_v47 = vadd.f32 %v3935_v12, %v3895_v9 }
 0x290   : > { %v3937_v41 = vpop.f32.mrf.mxu0 }
 0x291   : > { %v3978_v43 = vpop.f32.mrf.mxu1  ;;  %v3977_v51 = vadd.f32 %v3976_v45, %v3936_v47  ;;  %v3938_v60 = vadd.f32 %v3937_v41, %v3897_v37 }
 0x292   : > { %v3939_v0 = vpop.f32.mrf.mxu0 }
 0x293   : > { %v3980_v35 = vpop.f32.mrf.mxu1  ;;  %v3979_v50 = vadd.f32 %v3978_v43, %v3938_v60 }
 0x294   : > { %v3940_v55 = vpop.f32.mrf.mxu0 }
 0x295   : > { %v3981_v36 = vpop.f32.mrf.mxu1 }
 0x2ce   : > { %v4017_v52 = vpop.f32.mrf.mxu0 }
 0x2cf   : > { %v4058_v58 = vpop.f32.mrf.mxu1  ;;  %v4018_v61 = vadd.f32 %v4017_v52, %v3977_v51 }
 0x2d0   : > { %v4019_v62 = vpop.f32.mrf.mxu0 }
 0x2d1   : > { %v4060_v63 = vpop.f32.mrf.mxu1  ;;  %v4059_v54 = vadd.f32 %v4058_v58, %v4018_v61  ;;  %v4020_v3 = vadd.f32 %v4019_v62, %v3979_v50 }
 0x2d2   : > { %v4021_v53 = vpop.f32.mrf.mxu0 }
 0x2d3   : > { %v4062_v59 = vpop.f32.mrf.mxu1  ;;  %v4061_v5 = vadd.f32 %v4060_v63, %v4020_v3 }
 0x2d4   : > { %v4022_v1 = vpop.f32.mrf.mxu0 }
 0x2d5   : > { %v4063_v2 = vpop.f32.mrf.mxu1 }
 0x30e   : > { %v4099_v42 = vpop.f32.mrf.mxu0 }
 0x30f   : > { %v4140_v4 = vpop.f32.mrf.mxu1  ;;  %v4100_v7 = vadd.f32 %v4099_v42, %v4059_v54 }
 0x310   : > { %v4101_v8 = vpop.f32.mrf.mxu0 }
 0x311   : > { %v4142_v9 = vpop.f32.mrf.mxu1  ;;  %v4141_v13 = vadd.f32 %v4140_v4, %v4100_v7  ;;  %v4102_v18 = vadd.f32 %v4101_v8, %v4061_v5 }
 0x312   : > { %v4103_v10 = vpop.f32.mrf.mxu0 }
 0x313   : > { %v4144_v37 = vpop.f32.mrf.mxu1  ;;  %v4143_v19 = vadd.f32 %v4142_v9, %v4102_v18  ;;  %v4149_v14 = vmax.f32 %v4141_v13, 0.0 }
 0x314   : > { %v4104_v15 = vpop.f32.mrf.mxu0 }
 0x315   : > { %v4145_v16 = vpop.f32.mrf.mxu1  ;;  %v4150_v49 = vmax.f32 %v4143_v19, 0.0  ;;  %v4153_v23 = vpack.c.bf16 %v4149_v14, %v4149_v14 }
 0x317   : > { %v4154_v17 = vpack.c.bf16 %v4150_v49, %v4150_v49 }
 0x319   : > { %4483 = vmatprep.mubr.bf16.mxu1 %v4154_v17 }
 0x31a   : > { %4484 = vmatmul.mubr.bf16.vlgmr.msra.gmra.mxu1 %v4153_v23 }
 0x32e   : > { %v5172_v46 = vpop.f32.mrf.mxu0 }
 0x330   : > { %v5173_v40 = vpop.f32.mrf.mxu0 }
 0x331   : > { %v5174_v20 = vadd.f32 %v5173_v40, %v5172_v46 }
 0x332   : > { %v5175_v21 = vpop.f32.mrf.mxu0 }
 0x334   : > { %v5176_v22 = vpop.f32.mrf.mxu0 }
 0x3da   : > { %v5194_v24 = vpop.f32.mrf.mxu1 }
 0x3dc   : > { %v5195_v25 = vpop.f32.mrf.mxu1 }
 0x3dd   : > { %v5196_v27 = vadd.f32 %v5195_v25, %v5194_v24 }
 0x3de   : > { %v5197_v28 = vpop.f32.mrf.mxu1 }
 0x3df   : > { %v4486_v29 = vadd.f32 %v5196_v27, %v5174_v20 }
 0x3e0   : > { %v5198_v31 = vpop.f32.mrf.mxu1 }
 0x3e1   : > { %4492 = vst.msk [vmem:[%s277_s28] sm:$0x3] %vm4491_vm0, %v4486_v29 }
 0x3e2 PF: > { %p17_p1 = scmp.ge.s32.totalorder %s6200_s20, 4   ;;  %s7037_s15 = smov %s6137_s16 }
 0x3e3   : > { %s7038_s16 = smov %s6141_s17  ;;  %s7039_s17 = smov %s6210_s23 }
 0x3e4   : > { %s7040_s18 = smov %s6200_s20  ;;  %19 = sbr.rel (!%p17_p1) target bundleno = 5 (0x5), region = 92 }
 0x3e9   :  { %4512 = vsyncpa [#allocation3], 1 }
 0x3ea   :  { %4514 = vsyncpa [#allocation3 + $0x1], 1 }
 0x3eb   :  { %4515 = vsyncpa [#allocation5], 1 }
 0x3ec   :  { %4517 = vsyncpa [#allocation5 + $0x1], 1 }

</bundles_post_ra>
